<compile_context>
chip_gen: v7x
topology: tpu7x:2x2x1
jax: 0.10.0
libtpu: 0.0.40
codegen_flags: <defaults>
</compile_context>

<pallas_src>
import jax
import jax.numpy as jnp
from jax.experimental import pallas as pl
from jax.experimental.pallas import tpu as pltpu

# --- small, deterministic hyperparameters consistent with the module -------
OUTPUT_DIM = 256       # len(french_vocab) stand-in (vocab)
EMBEDDING_DIM = 64     # logical embedding width
EMB_PAD = 128          # lane-padded embedding width
HIDDEN_DIM = 128
NUM_LAYERS = 3
BATCH = 8              # fills one f32 (8, 128) sublane tile
T_STEPS = 8            # decode steps handled by one pallas_call


# ---------------------------------------------------------------------------
# Fused kernel: T decode steps of (one-hot embedding gather + 3 fused-gate
# LSTM cells + vocab projection), weights & state VMEM-resident.
# ---------------------------------------------------------------------------
def decoder_kernel(tok_ref,                     # (T, B) int32, SMEM (prefetch)
                   emb_ref,                     # (V, EMB_PAD) bf16
                   w_ref,                       # (L, EMB_PAD+H, 4H) bf16
                   b_ref,                       # (L, 1, 4H) f32
                   fc_w_ref,                    # (H, V) bf16
                   fc_b_ref,                    # (1, V) f32
                   h0_ref, c0_ref,              # (L, B, H) f32
                   pred_ref,                    # (1, B, V) f32  (block over T)
                   h_out_ref, c_out_ref):       # (L, B, H) f32  (resident)
    H = HIDDEN_DIM
    t = pl.program_id(0)

    # Initialize the VMEM-resident state blocks from the provided state.
    @pl.when(t == 0)
    def _():
        h_out_ref[...] = h0_ref[...]
        c_out_ref[...] = c0_ref[...]

    # --- embedding gather as a one-hot matmul on the MXU -------------------
    row_ids = jax.lax.broadcasted_iota(jnp.int32, (BATCH, OUTPUT_DIM), 0)
    col_ids = jax.lax.broadcasted_iota(jnp.int32, (BATCH, OUTPUT_DIM), 1)
    tok_mat = jnp.zeros((BATCH, OUTPUT_DIM), jnp.int32)
    for b in range(BATCH):                       # B=8 scalar SMEM reads
        tok_mat = jnp.where(row_ids == b, tok_ref[t, b], tok_mat)
    onehot = (col_ids == tok_mat).astype(jnp.bfloat16)          # (B, V)
    x = jnp.dot(onehot, emb_ref[...],
                preferred_element_type=jnp.float32).astype(jnp.bfloat16)
    # x: (B, EMB_PAD) bf16; padded columns are exactly zero (zero-padded table)

    # --- 3 LSTM layers, fused [x ; h] @ [W_ih ; W_hh] gate matmul -----------
    for layer in range(NUM_LAYERS):
        h_prev = h_out_ref[layer]                                # (B, H) f32
        c_prev = c_out_ref[layer]                                # (B, H) f32
        xh = jnp.concatenate([x, h_prev.astype(jnp.bfloat16)], axis=-1)
        gates = (jnp.dot(xh, w_ref[layer],
                         preferred_element_type=jnp.float32)
                 + b_ref[layer])                                 # (B, 4H) f32
        i = jax.nn.sigmoid(gates[:, 0 * H:1 * H])
        f = jax.nn.sigmoid(gates[:, 1 * H:2 * H])
        g = jnp.tanh(gates[:, 2 * H:3 * H])
        o = jax.nn.sigmoid(gates[:, 3 * H:4 * H])
        c_new = f * c_prev + i * g                               # f32 recurrence
        h_new = o * jnp.tanh(c_new)                              # f32
        h_out_ref[layer] = h_new
        c_out_ref[layer] = c_new
        x = h_new.astype(jnp.bfloat16)           # feed next layer (MXU operand)

    # --- vocab projection (fc_out) ------------------------------------------
    pred = (jnp.dot(x, fc_w_ref[...], preferred_element_type=jnp.float32)
            + fc_b_ref[...])
    pred_ref[0] = pred


@jax.jit
def decoder_forward(params, tokens, hidden, cell):
    """tokens: (T, B) int32. Returns (preds (T,B,V), new_hidden, new_cell)."""
    T = tokens.shape[0]
    K = EMB_PAD + HIDDEN_DIM

    grid_spec = pltpu.PrefetchScalarGridSpec(
        num_scalar_prefetch=1,
        grid=(T,),
        in_specs=[
            pl.BlockSpec((OUTPUT_DIM, EMB_PAD), lambda t, tok: (0, 0)),
            pl.BlockSpec((NUM_LAYERS, K, 4 * HIDDEN_DIM),
                         lambda t, tok: (0, 0, 0)),
            pl.BlockSpec((NUM_LAYERS, 1, 4 * HIDDEN_DIM),
                         lambda t, tok: (0, 0, 0)),
            pl.BlockSpec((HIDDEN_DIM, OUTPUT_DIM), lambda t, tok: (0, 0)),
            pl.BlockSpec((1, OUTPUT_DIM), lambda t, tok: (0, 0)),
            pl.BlockSpec((NUM_LAYERS, BATCH, HIDDEN_DIM),
                         lambda t, tok: (0, 0, 0)),
            pl.BlockSpec((NUM_LAYERS, BATCH, HIDDEN_DIM),
                         lambda t, tok: (0, 0, 0)),
        ],
        out_specs=(
            pl.BlockSpec((1, BATCH, OUTPUT_DIM), lambda t, tok: (t, 0, 0)),
            pl.BlockSpec((NUM_LAYERS, BATCH, HIDDEN_DIM),
                         lambda t, tok: (0, 0, 0)),
            pl.BlockSpec((NUM_LAYERS, BATCH, HIDDEN_DIM),
                         lambda t, tok: (0, 0, 0)),
        ),
    )

    preds, new_h, new_c = pl.pallas_call(
        decoder_kernel,
        out_shape=(
            jax.ShapeDtypeStruct((T, BATCH, OUTPUT_DIM), jnp.float32),
            jax.ShapeDtypeStruct((NUM_LAYERS, BATCH, HIDDEN_DIM), jnp.float32),
            jax.ShapeDtypeStruct((NUM_LAYERS, BATCH, HIDDEN_DIM), jnp.float32),
        ),
        grid_spec=grid_spec,
        compiler_params=pltpu.CompilerParams(
            dimension_semantics=("arbitrary",)),   # step t+1 depends on step t
    )(tokens, params["emb"], params["w_gates"], params["b"],
      params["fc_w"], params["fc_b"], hidden, cell)
    return preds, new_h, new_c


# ---------------------------------------------------------------------------
# Parameter init (deterministic, PyTorch-style uniform(-1/sqrt(H), 1/sqrt(H)))
# ---------------------------------------------------------------------------
def init_params(key):
    keys = jax.random.split(key, 3 + 4 * NUM_LAYERS)
    bound = float(1.0 / (HIDDEN_DIM ** 0.5))
    idx = 0

    emb = jax.random.normal(keys[idx], (OUTPUT_DIM, EMBEDDING_DIM),
                            jnp.float32); idx += 1
    # lane-pad 64 -> 128 with exact zeros (keeps padded activations zero)
    emb_pad = jnp.pad(emb, ((0, 0), (0, EMB_PAD - EMBEDDING_DIM)))

    w_list, b_list = [], []
    for layer in range(NUM_LAYERS):
        in_dim = EMBEDDING_DIM if layer == 0 else HIDDEN_DIM
        w_ih = jax.random.uniform(keys[idx], (4 * HIDDEN_DIM, in_dim),
                                  jnp.float32, -bound, bound); idx += 1
        w_hh = jax.random.uniform(keys[idx], (4 * HIDDEN_DIM, HIDDEN_DIM),
                                  jnp.float32, -bound, bound); idx += 1
        b_ih = jax.random.uniform(keys[idx], (4 * HIDDEN_DIM,),
                                  jnp.float32, -bound, bound); idx += 1
        b_hh = jax.random.uniform(keys[idx], (4 * HIDDEN_DIM,),
                                  jnp.float32, -bound, bound); idx += 1
        w_ih_t = w_ih.T                                      # (in_dim, 4H)
        if in_dim < EMB_PAD:
            w_ih_t = jnp.pad(w_ih_t, ((0, EMB_PAD - in_dim), (0, 0)))
        # fused [W_ih ; W_hh]^T : (EMB_PAD + H, 4H) == (256, 512)
        w_list.append(jnp.concatenate([w_ih_t, w_hh.T], axis=0))
        b_list.append((b_ih + b_hh)[None, :])                # (1, 4H)

    fc_w = jax.random.uniform(keys[idx], (OUTPUT_DIM, HIDDEN_DIM),
                              jnp.float32, -bound, bound); idx += 1
    fc_b = jax.random.uniform(keys[idx], (OUTPUT_DIM,),
                              jnp.float32, -bound, bound)

    return dict(
        emb=emb_pad.astype(jnp.bfloat16),                 # (V, 128)   bf16
        w_gates=jnp.stack(w_list).astype(jnp.bfloat16),   # (L,256,512) bf16
        b=jnp.stack(b_list),                              # (L,1,512)  f32
        fc_w=fc_w.T.astype(jnp.bfloat16),                 # (H, V)     bf16
        fc_b=fc_b[None, :],                               # (1, V)     f32
    )


# ---------------------------------------------------------------------------
# Pure-JAX reference (same math, same bf16 weight rounding) for sanity check
# ---------------------------------------------------------------------------
def decoder_forward_ref(params, tokens, hidden, cell):
    H = HIDDEN_DIM
    hp = jax.lax.Precision.HIGHEST
    emb = params["emb"].astype(jnp.float32)
    w = params["w_gates"].astype(jnp.float32)
    fc_w = params["fc_w"].astype(jnp.float32)
    h, c = hidden, cell
    preds = []
    for t in range(tokens.shape[0]):
        x = emb[tokens[t]]                                   # (B, 128)
        new_h, new_c = [], []
        for layer in range(NUM_LAYERS):
            h_prev = h[layer].astype(jnp.bfloat16).astype(jnp.float32)
            xh = jnp.concatenate([x, h_prev], axis=-1)
            gates = jnp.dot(xh, w[layer], precision=hp) + params["b"][layer]
            i = jax.nn.sigmoid(gates[:, 0 * H:1 * H])
            f = jax.nn.sigmoid(gates[:, 1 * H:2 * H])
            g = jnp.tanh(gates[:, 2 * H:3 * H])
            o = jax.nn.sigmoid(gates[:, 3 * H:4 * H])
            c_new = f * c[layer] + i * g
            h_new = o * jnp.tanh(c_new)
            new_h.append(h_new)
            new_c.append(c_new)
            x = h_new.astype(jnp.bfloat16).astype(jnp.float32)
        h, c = jnp.stack(new_h), jnp.stack(new_c)
        preds.append(jnp.dot(x, fc_w, precision=hp) + params["fc_b"])
    return jnp.stack(preds), h, c


if __name__ == "__main__":
    key = jax.random.PRNGKey(0)
    k_param, k_tok, k_h, k_c = jax.random.split(key, 4)

    params = init_params(k_param)
    tokens = jax.random.randint(k_tok, (T_STEPS, BATCH), 0, OUTPUT_DIM,
                                dtype=jnp.int32)
    hidden = jax.random.normal(k_h, (NUM_LAYERS, BATCH, HIDDEN_DIM), jnp.float32)
    cell = jax.random.normal(k_c, (NUM_LAYERS, BATCH, HIDDEN_DIM), jnp.float32)

    preds, new_hidden, new_cell = decoder_forward(params, tokens, hidden, cell)
    jax.block_until_ready((preds, new_hidden, new_cell))

    ref_preds, ref_h, ref_c = decoder_forward_ref(params, tokens, hidden, cell)

    assert preds.shape == (T_STEPS, BATCH, OUTPUT_DIM)
    assert new_hidden.shape == (NUM_LAYERS, BATCH, HIDDEN_DIM)
    assert new_cell.shape == (NUM_LAYERS, BATCH, HIDDEN_DIM)
    assert jnp.allclose(preds, ref_preds, atol=1e-2, rtol=1e-2)
    assert jnp.allclose(new_hidden, ref_h, atol=1e-2, rtol=1e-2)
    assert jnp.allclose(new_cell, ref_c, atol=1e-2, rtol=1e-2)

    print("KERNEL_OK")
</pallas_src>

<mosaic_0001>
module attributes {stable_mosaic.version = 11 : i64} {
  func.func @decoder_kernel(%arg0: i32, %arg1: memref<8x8xi32, #tpu.memory_space<smem>>, %arg2: memref<256x128xbf16, #tpu.memory_space<vmem>>, %arg3: memref<3x256x512xbf16, #tpu.memory_space<vmem>>, %arg4: memref<3x1x512xf32, #tpu.memory_space<vmem>>, %arg5: memref<128x256xbf16, #tpu.memory_space<vmem>>, %arg6: memref<1x256xf32, #tpu.memory_space<vmem>>, %arg7: memref<3x8x128xf32, #tpu.memory_space<vmem>>, %arg8: memref<3x8x128xf32, #tpu.memory_space<vmem>>, %arg9: memref<1x8x256xf32, #tpu.memory_space<vmem>>, %arg10: memref<3x8x128xf32, #tpu.memory_space<vmem>>, %arg11: memref<3x8x128xf32, #tpu.memory_space<vmem>>) attributes {dimension_semantics = [#tpu.dimension_semantics<arbitrary>], iteration_bounds = array<i64: 8>, scalar_prefetch = 1 : i64, scratch_operands = 0 : i64, tpu.core_type = #tpu.core_type<tc>, window_params = [{pipeline_mode = #tpu.pipeline_mode<synchronous>, transform_indices = @transform_0, window_bounds = array<i64: 256, 128>}, {pipeline_mode = #tpu.pipeline_mode<synchronous>, transform_indices = @transform_1, window_bounds = array<i64: 3, 256, 512>}, {pipeline_mode = #tpu.pipeline_mode<synchronous>, transform_indices = @transform_2, window_bounds = array<i64: 3, 1, 512>}, {pipeline_mode = #tpu.pipeline_mode<synchronous>, transform_indices = @transform_3, window_bounds = array<i64: 128, 256>}, {pipeline_mode = #tpu.pipeline_mode<synchronous>, transform_indices = @transform_4, window_bounds = array<i64: 1, 256>}, {pipeline_mode = #tpu.pipeline_mode<synchronous>, transform_indices = @transform_5, window_bounds = array<i64: 3, 8, 128>}, {pipeline_mode = #tpu.pipeline_mode<synchronous>, transform_indices = @transform_6, window_bounds = array<i64: 3, 8, 128>}, {transform_indices = @transform_7, window_bounds = array<i64: 1, 8, 256>}, {pipeline_mode = #tpu.pipeline_mode<synchronous>, transform_indices = @transform_8, window_bounds = array<i64: 3, 8, 128>}, {pipeline_mode = #tpu.pipeline_mode<synchronous>, transform_indices = @transform_9, window_bounds = array<i64: 3, 8, 128>}]} {
    %c0_i32 = arith.constant 0 : i32
    %0 = arith.cmpi eq, %arg0, %c0_i32 : i32
    %1 = arith.extui %0 : i1 to i32
    %c0_i32_0 = arith.constant 0 : i32
    %2 = arith.cmpi ne, %1, %c0_i32_0 : i32
    scf.if %2 {
      %c0_79 = arith.constant 0 : index
      %c0_80 = arith.constant 0 : index
      %c0_81 = arith.constant 0 : index
      %204 = vector.load %arg7[%c0_79, %c0_80, %c0_81] : memref<3x8x128xf32, #tpu.memory_space<vmem>>, vector<3x8x128xf32>
      %c0_82 = arith.constant 0 : index
      %c0_83 = arith.constant 0 : index
      %c0_84 = arith.constant 0 : index
      %205 = vector.load %arg10[%c0_82, %c0_83, %c0_84] : memref<3x8x128xf32, #tpu.memory_space<vmem>>, vector<3x8x128xf32>
      tpu.vector_store %arg10[%c0_82, %c0_83, %c0_84], %204 {strides = array<i32>} : memref<3x8x128xf32, #tpu.memory_space<vmem>>, vector<3x8x128xf32>,
      %c0_85 = arith.constant 0 : index
      %c0_86 = arith.constant 0 : index
      %c0_87 = arith.constant 0 : index
      %206 = vector.load %arg8[%c0_85, %c0_86, %c0_87] : memref<3x8x128xf32, #tpu.memory_space<vmem>>, vector<3x8x128xf32>
      %c0_88 = arith.constant 0 : index
      %c0_89 = arith.constant 0 : index
      %c0_90 = arith.constant 0 : index
      %207 = vector.load %arg11[%c0_88, %c0_89, %c0_90] : memref<3x8x128xf32, #tpu.memory_space<vmem>>, vector<3x8x128xf32>
      tpu.vector_store %arg11[%c0_88, %c0_89, %c0_90], %206 {strides = array<i32>} : memref<3x8x128xf32, #tpu.memory_space<vmem>>, vector<3x8x128xf32>,
    } else {
    }
    %3 = tpu.iota {dimensions = array<i32: 0>} : vector<8x256xi32>
    %4 = tpu.iota {dimensions = array<i32: 1>} : vector<8x256xi32>
    %c0_i32_1 = arith.constant 0 : i32
    %5 = vector.broadcast %c0_i32_1 : i32 to vector<8x256xi32>
    %c0_i32_2 = arith.constant 0 : i32
    %6 = vector.broadcast %c0_i32_2 : i32 to vector<8x256xi32>
    %7 = arith.cmpi eq, %3, %6 : vector<8x256xi32>
    %8 = arith.index_cast %arg0 : i32 to index
    %c0 = arith.constant 0 : index
    %9 = memref.load %arg1[%8, %c0] : memref<8x8xi32, #tpu.memory_space<smem>>
    %10 = vector.broadcast %9 : i32 to vector<8x256xi32>
    %11 = arith.select %7, %10, %5 : vector<8x256xi1>, vector<8x256xi32>
    %c1_i32 = arith.constant 1 : i32
    %12 = vector.broadcast %c1_i32 : i32 to vector<8x256xi32>
    %13 = arith.cmpi eq, %3, %12 : vector<8x256xi32>
    %14 = arith.index_cast %arg0 : i32 to index
    %c1 = arith.constant 1 : index
    %15 = memref.load %arg1[%14, %c1] : memref<8x8xi32, #tpu.memory_space<smem>>
    %16 = vector.broadcast %15 : i32 to vector<8x256xi32>
    %17 = arith.select %13, %16, %11 : vector<8x256xi1>, vector<8x256xi32>
    %c2_i32 = arith.constant 2 : i32
    %18 = vector.broadcast %c2_i32 : i32 to vector<8x256xi32>
    %19 = arith.cmpi eq, %3, %18 : vector<8x256xi32>
    %20 = arith.index_cast %arg0 : i32 to index
    %c2 = arith.constant 2 : index
    %21 = memref.load %arg1[%20, %c2] : memref<8x8xi32, #tpu.memory_space<smem>>
    %22 = vector.broadcast %21 : i32 to vector<8x256xi32>
    %23 = arith.select %19, %22, %17 : vector<8x256xi1>, vector<8x256xi32>
    %c3_i32 = arith.constant 3 : i32
    %24 = vector.broadcast %c3_i32 : i32 to vector<8x256xi32>
    %25 = arith.cmpi eq, %3, %24 : vector<8x256xi32>
    %26 = arith.index_cast %arg0 : i32 to index
    %c3 = arith.constant 3 : index
    %27 = memref.load %arg1[%26, %c3] : memref<8x8xi32, #tpu.memory_space<smem>>
    %28 = vector.broadcast %27 : i32 to vector<8x256xi32>
    %29 = arith.select %25, %28, %23 : vector<8x256xi1>, vector<8x256xi32>
    %c4_i32 = arith.constant 4 : i32
    %30 = vector.broadcast %c4_i32 : i32 to vector<8x256xi32>
    %31 = arith.cmpi eq, %3, %30 : vector<8x256xi32>
    %32 = arith.index_cast %arg0 : i32 to index
    %c4 = arith.constant 4 : index
    %33 = memref.load %arg1[%32, %c4] : memref<8x8xi32, #tpu.memory_space<smem>>
    %34 = vector.broadcast %33 : i32 to vector<8x256xi32>
    %35 = arith.select %31, %34, %29 : vector<8x256xi1>, vector<8x256xi32>
    %c5_i32 = arith.constant 5 : i32
    %36 = vector.broadcast %c5_i32 : i32 to vector<8x256xi32>
    %37 = arith.cmpi eq, %3, %36 : vector<8x256xi32>
    %38 = arith.index_cast %arg0 : i32 to index
    %c5 = arith.constant 5 : index
    %39 = memref.load %arg1[%38, %c5] : memref<8x8xi32, #tpu.memory_space<smem>>
    %40 = vector.broadcast %39 : i32 to vector<8x256xi32>
    %41 = arith.select %37, %40, %35 : vector<8x256xi1>, vector<8x256xi32>
    %c6_i32 = arith.constant 6 : i32
    %42 = vector.broadcast %c6_i32 : i32 to vector<8x256xi32>
    %43 = arith.cmpi eq, %3, %42 : vector<8x256xi32>
    %44 = arith.index_cast %arg0 : i32 to index
    %c6 = arith.constant 6 : index
    %45 = memref.load %arg1[%44, %c6] : memref<8x8xi32, #tpu.memory_space<smem>>
    %46 = vector.broadcast %45 : i32 to vector<8x256xi32>
    %47 = arith.select %43, %46, %41 : vector<8x256xi1>, vector<8x256xi32>
    %c7_i32 = arith.constant 7 : i32
    %48 = vector.broadcast %c7_i32 : i32 to vector<8x256xi32>
    %49 = arith.cmpi eq, %3, %48 : vector<8x256xi32>
    %50 = arith.index_cast %arg0 : i32 to index
    %c7 = arith.constant 7 : index
    %51 = memref.load %arg1[%50, %c7] : memref<8x8xi32, #tpu.memory_space<smem>>
    %52 = vector.broadcast %51 : i32 to vector<8x256xi32>
    %53 = arith.select %49, %52, %47 : vector<8x256xi1>, vector<8x256xi32>
    %54 = arith.cmpi eq, %4, %53 : vector<8x256xi32>
    %55 = arith.extui %54 : vector<8x256xi1> to vector<8x256xi32>
    %56 = arith.sitofp %55 : vector<8x256xi32> to vector<8x256xf32>
    %57 = arith.truncf %56 : vector<8x256xf32> to vector<8x256xbf16>
    %c0_3 = arith.constant 0 : index
    %c0_4 = arith.constant 0 : index
    %58 = vector.load %arg2[%c0_3, %c0_4] : memref<256x128xbf16, #tpu.memory_space<vmem>>, vector<256x128xbf16>
    %cst = arith.constant dense<0.000000e+00> : vector<8x128xf32>
    %59 = tpu.matmul %57, %58, %cst {dimension_numbers = #tpu.dot_dimension_numbers<[1], [0], [0], [1], [0, 0, 1, 1], [], []>} : vector<8x256xbf16>, vector<256x128xbf16>, vector<8x128xf32> -> vector<8x128xf32>
    %60 = arith.truncf %59 : vector<8x128xf32> to vector<8x128xbf16>
    %c0_5 = arith.constant 0 : index
    %c0_6 = arith.constant 0 : index
    %c0_7 = arith.constant 0 : index
    %61 = vector.load %arg10[%c0_5, %c0_6, %c0_7] : memref<3x8x128xf32, #tpu.memory_space<vmem>>, vector<1x8x128xf32>
    %62 = vector.shape_cast %61 : vector<1x8x128xf32> to vector<8x128xf32>
    %c0_8 = arith.constant 0 : index
    %c0_9 = arith.constant 0 : index
    %c0_10 = arith.constant 0 : index
    %63 = vector.load %arg11[%c0_8, %c0_9, %c0_10] : memref<3x8x128xf32, #tpu.memory_space<vmem>>, vector<1x8x128xf32>
    %64 = vector.shape_cast %63 : vector<1x8x128xf32> to vector<8x128xf32>
    %65 = arith.truncf %62 : vector<8x128xf32> to vector<8x128xbf16>
    %66 = tpu.concatenate %60, %65 in 1 : vector<8x128xbf16>, vector<8x128xbf16> -> vector<8x256xbf16>
    %c0_11 = arith.constant 0 : index
    %c0_12 = arith.constant 0 : index
    %c0_13 = arith.constant 0 : index
    %67 = vector.load %arg3[%c0_11, %c0_12, %c0_13] : memref<3x256x512xbf16, #tpu.memory_space<vmem>>, vector<1x256x512xbf16>
    %68 = vector.shape_cast %67 : vector<1x256x512xbf16> to vector<256x512xbf16>
    %cst_14 = arith.constant dense<0.000000e+00> : vector<8x512xf32>
    %69 = tpu.matmul %66, %68, %cst_14 {dimension_numbers = #tpu.dot_dimension_numbers<[1], [0], [0], [1], [0, 0, 1, 1], [], []>} : vector<8x256xbf16>, vector<256x512xbf16>, vector<8x512xf32> -> vector<8x512xf32>
    %c0_15 = arith.constant 0 : index
    %c0_16 = arith.constant 0 : index
    %c0_17 = arith.constant 0 : index
    %70 = vector.load %arg4[%c0_15, %c0_16, %c0_17] : memref<3x1x512xf32, #tpu.memory_space<vmem>>, vector<1x1x512xf32>
    %71 = vector.shape_cast %70 : vector<1x1x512xf32> to vector<1x512xf32>
    %72 = vector.broadcast %71 : vector<1x512xf32> to vector<8x512xf32>
    %73 = arith.addf %69, %72 : vector<8x512xf32>
    %74 = vector.extract_strided_slice %73 {offsets = [0, 0], sizes = [8, 128], strides = [1, 1]} : vector<8x512xf32> to vector<8x128xf32>
    %75 = arith.negf %74 : vector<8x128xf32>
    %76 = math.exp %75 : vector<8x128xf32>
    %cst_18 = arith.constant 1.000000e+00 : f32
    %77 = vector.broadcast %cst_18 : f32 to vector<8x128xf32>
    %78 = arith.addf %77, %76 : vector<8x128xf32>
    %79 = arith.divf %77, %78 : vector<8x128xf32>
    %80 = vector.extract_strided_slice %73 {offsets = [0, 128], sizes = [8, 128], strides = [1, 1]} : vector<8x512xf32> to vector<8x128xf32>
    %81 = arith.negf %80 : vector<8x128xf32>
    %82 = math.exp %81 : vector<8x128xf32>
    %cst_19 = arith.constant 1.000000e+00 : f32
    %83 = vector.broadcast %cst_19 : f32 to vector<8x128xf32>
    %84 = arith.addf %83, %82 : vector<8x128xf32>
    %85 = arith.divf %83, %84 : vector<8x128xf32>
    %86 = vector.extract_strided_slice %73 {offsets = [0, 256], sizes = [8, 128], strides = [1, 1]} : vector<8x512xf32> to vector<8x128xf32>
    %87 = math.tanh %86 : vector<8x128xf32>
    %88 = vector.extract_strided_slice %73 {offsets = [0, 384], sizes = [8, 128], strides = [1, 1]} : vector<8x512xf32> to vector<8x128xf32>
    %89 = arith.negf %88 : vector<8x128xf32>
    %90 = math.exp %89 : vector<8x128xf32>
    %cst_20 = arith.constant 1.000000e+00 : f32
    %91 = vector.broadcast %cst_20 : f32 to vector<8x128xf32>
    %92 = arith.addf %91, %90 : vector<8x128xf32>
    %93 = arith.divf %91, %92 : vector<8x128xf32>
    %94 = arith.mulf %85, %64 : vector<8x128xf32>
    %95 = arith.mulf %79, %87 : vector<8x128xf32>
    %96 = arith.addf %94, %95 : vector<8x128xf32>
    %97 = math.tanh %96 : vector<8x128xf32>
    %98 = arith.mulf %93, %97 : vector<8x128xf32>
    %c0_21 = arith.constant 0 : index
    %c0_22 = arith.constant 0 : index
    %c0_23 = arith.constant 0 : index
    %99 = vector.load %arg10[%c0_21, %c0_22, %c0_23] : memref<3x8x128xf32, #tpu.memory_space<vmem>>, vector<1x8x128xf32>
    %100 = vector.shape_cast %99 : vector<1x8x128xf32> to vector<8x128xf32>
    %101 = vector.shape_cast %98 : vector<8x128xf32> to vector<1x8x128xf32>
    tpu.vector_store %arg10[%c0_21, %c0_22, %c0_23], %101 {strides = array<i32>} : memref<3x8x128xf32, #tpu.memory_space<vmem>>, vector<1x8x128xf32>,
    %c0_24 = arith.constant 0 : index
    %c0_25 = arith.constant 0 : index
    %c0_26 = arith.constant 0 : index
    %102 = vector.load %arg11[%c0_24, %c0_25, %c0_26] : memref<3x8x128xf32, #tpu.memory_space<vmem>>, vector<1x8x128xf32>
    %103 = vector.shape_cast %102 : vector<1x8x128xf32> to vector<8x128xf32>
    %104 = vector.shape_cast %96 : vector<8x128xf32> to vector<1x8x128xf32>
    tpu.vector_store %arg11[%c0_24, %c0_25, %c0_26], %104 {strides = array<i32>} : memref<3x8x128xf32, #tpu.memory_space<vmem>>, vector<1x8x128xf32>,
    %105 = arith.truncf %98 : vector<8x128xf32> to vector<8x128xbf16>
    %c1_27 = arith.constant 1 : index
    %c0_28 = arith.constant 0 : index
    %c0_29 = arith.constant 0 : index
    %106 = vector.load %arg10[%c1_27, %c0_28, %c0_29] : memref<3x8x128xf32, #tpu.memory_space<vmem>>, vector<1x8x128xf32>
    %107 = vector.shape_cast %106 : vector<1x8x128xf32> to vector<8x128xf32>
    %c1_30 = arith.constant 1 : index
    %c0_31 = arith.constant 0 : index
    %c0_32 = arith.constant 0 : index
    %108 = vector.load %arg11[%c1_30, %c0_31, %c0_32] : memref<3x8x128xf32, #tpu.memory_space<vmem>>, vector<1x8x128xf32>
    %109 = vector.shape_cast %108 : vector<1x8x128xf32> to vector<8x128xf32>
    %110 = arith.truncf %107 : vector<8x128xf32> to vector<8x128xbf16>
    %111 = tpu.concatenate %105, %110 in 1 : vector<8x128xbf16>, vector<8x128xbf16> -> vector<8x256xbf16>
    %c1_33 = arith.constant 1 : index
    %c0_34 = arith.constant 0 : index
    %c0_35 = arith.constant 0 : index
    %112 = vector.load %arg3[%c1_33, %c0_34, %c0_35] : memref<3x256x512xbf16, #tpu.memory_space<vmem>>, vector<1x256x512xbf16>
    %113 = vector.shape_cast %112 : vector<1x256x512xbf16> to vector<256x512xbf16>
    %cst_36 = arith.constant dense<0.000000e+00> : vector<8x512xf32>
    %114 = tpu.matmul %111, %113, %cst_36 {dimension_numbers = #tpu.dot_dimension_numbers<[1], [0], [0], [1], [0, 0, 1, 1], [], []>} : vector<8x256xbf16>, vector<256x512xbf16>, vector<8x512xf32> -> vector<8x512xf32>
    %c1_37 = arith.constant 1 : index
    %c0_38 = arith.constant 0 : index
    %c0_39 = arith.constant 0 : index
    %115 = vector.load %arg4[%c1_37, %c0_38, %c0_39] : memref<3x1x512xf32, #tpu.memory_space<vmem>>, vector<1x1x512xf32>
    %116 = vector.shape_cast %115 : vector<1x1x512xf32> to vector<1x512xf32>
    %117 = vector.broadcast %116 : vector<1x512xf32> to vector<8x512xf32>
    %118 = arith.addf %114, %117 : vector<8x512xf32>
    %119 = vector.extract_strided_slice %118 {offsets = [0, 0], sizes = [8, 128], strides = [1, 1]} : vector<8x512xf32> to vector<8x128xf32>
    %120 = arith.negf %119 : vector<8x128xf32>
    %121 = math.exp %120 : vector<8x128xf32>
    %cst_40 = arith.constant 1.000000e+00 : f32
    %122 = vector.broadcast %cst_40 : f32 to vector<8x128xf32>
    %123 = arith.addf %122, %121 : vector<8x128xf32>
    %124 = arith.divf %122, %123 : vector<8x128xf32>
    %125 = vector.extract_strided_slice %118 {offsets = [0, 128], sizes = [8, 128], strides = [1, 1]} : vector<8x512xf32> to vector<8x128xf32>
    %126 = arith.negf %125 : vector<8x128xf32>
    %127 = math.exp %126 : vector<8x128xf32>
    %cst_41 = arith.constant 1.000000e+00 : f32
    %128 = vector.broadcast %cst_41 : f32 to vector<8x128xf32>
    %129 = arith.addf %128, %127 : vector<8x128xf32>
    %130 = arith.divf %128, %129 : vector<8x128xf32>
    %131 = vector.extract_strided_slice %118 {offsets = [0, 256], sizes = [8, 128], strides = [1, 1]} : vector<8x512xf32> to vector<8x128xf32>
    %132 = math.tanh %131 : vector<8x128xf32>
    %133 = vector.extract_strided_slice %118 {offsets = [0, 384], sizes = [8, 128], strides = [1, 1]} : vector<8x512xf32> to vector<8x128xf32>
    %134 = arith.negf %133 : vector<8x128xf32>
    %135 = math.exp %134 : vector<8x128xf32>
    %cst_42 = arith.constant 1.000000e+00 : f32
    %136 = vector.broadcast %cst_42 : f32 to vector<8x128xf32>
    %137 = arith.addf %136, %135 : vector<8x128xf32>
    %138 = arith.divf %136, %137 : vector<8x128xf32>
    %139 = arith.mulf %130, %109 : vector<8x128xf32>
    %140 = arith.mulf %124, %132 : vector<8x128xf32>
    %141 = arith.addf %139, %140 : vector<8x128xf32>
    %142 = math.tanh %141 : vector<8x128xf32>
    %143 = arith.mulf %138, %142 : vector<8x128xf32>
    %c1_43 = arith.constant 1 : index
    %c0_44 = arith.constant 0 : index
    %c0_45 = arith.constant 0 : index
    %144 = vector.load %arg10[%c1_43, %c0_44, %c0_45] : memref<3x8x128xf32, #tpu.memory_space<vmem>>, vector<1x8x128xf32>
    %145 = vector.shape_cast %144 : vector<1x8x128xf32> to vector<8x128xf32>
    %146 = vector.shape_cast %143 : vector<8x128xf32> to vector<1x8x128xf32>
    tpu.vector_store %arg10[%c1_43, %c0_44, %c0_45], %146 {strides = array<i32>} : memref<3x8x128xf32, #tpu.memory_space<vmem>>, vector<1x8x128xf32>,
    %c1_46 = arith.constant 1 : index
    %c0_47 = arith.constant 0 : index
    %c0_48 = arith.constant 0 : index
    %147 = vector.load %arg11[%c1_46, %c0_47, %c0_48] : memref<3x8x128xf32, #tpu.memory_space<vmem>>, vector<1x8x128xf32>
    %148 = vector.shape_cast %147 : vector<1x8x128xf32> to vector<8x128xf32>
    %149 = vector.shape_cast %141 : vector<8x128xf32> to vector<1x8x128xf32>
    tpu.vector_store %arg11[%c1_46, %c0_47, %c0_48], %149 {strides = array<i32>} : memref<3x8x128xf32, #tpu.memory_space<vmem>>, vector<1x8x128xf32>,
    %150 = arith.truncf %143 : vector<8x128xf32> to vector<8x128xbf16>
    %c2_49 = arith.constant 2 : index
    %c0_50 = arith.constant 0 : index
    %c0_51 = arith.constant 0 : index
    %151 = vector.load %arg10[%c2_49, %c0_50, %c0_51] : memref<3x8x128xf32, #tpu.memory_space<vmem>>, vector<1x8x128xf32>
    %152 = vector.shape_cast %151 : vector<1x8x128xf32> to vector<8x128xf32>
    %c2_52 = arith.constant 2 : index
    %c0_53 = arith.constant 0 : index
    %c0_54 = arith.constant 0 : index
    %153 = vector.load %arg11[%c2_52, %c0_53, %c0_54] : memref<3x8x128xf32, #tpu.memory_space<vmem>>, vector<1x8x128xf32>
    %154 = vector.shape_cast %153 : vector<1x8x128xf32> to vector<8x128xf32>
    %155 = arith.truncf %152 : vector<8x128xf32> to vector<8x128xbf16>
    %156 = tpu.concatenate %150, %155 in 1 : vector<8x128xbf16>, vector<8x128xbf16> -> vector<8x256xbf16>
    %c2_55 = arith.constant 2 : index
    %c0_56 = arith.constant 0 : index
    %c0_57 = arith.constant 0 : index
    %157 = vector.load %arg3[%c2_55, %c0_56, %c0_57] : memref<3x256x512xbf16, #tpu.memory_space<vmem>>, vector<1x256x512xbf16>
    %158 = vector.shape_cast %157 : vector<1x256x512xbf16> to vector<256x512xbf16>
    %cst_58 = arith.constant dense<0.000000e+00> : vector<8x512xf32>
    %159 = tpu.matmul %156, %158, %cst_58 {dimension_numbers = #tpu.dot_dimension_numbers<[1], [0], [0], [1], [0, 0, 1, 1], [], []>} : vector<8x256xbf16>, vector<256x512xbf16>, vector<8x512xf32> -> vector<8x512xf32>
    %c2_59 = arith.constant 2 : index
    %c0_60 = arith.constant 0 : index
    %c0_61 = arith.constant 0 : index
    %160 = vector.load %arg4[%c2_59, %c0_60, %c0_61] : memref<3x1x512xf32, #tpu.memory_space<vmem>>, vector<1x1x512xf32>
    %161 = vector.shape_cast %160 : vector<1x1x512xf32> to vector<1x512xf32>
    %162 = vector.broadcast %161 : vector<1x512xf32> to vector<8x512xf32>
    %163 = arith.addf %159, %162 : vector<8x512xf32>
    %164 = vector.extract_strided_slice %163 {offsets = [0, 0], sizes = [8, 128], strides = [1, 1]} : vector<8x512xf32> to vector<8x128xf32>
    %165 = arith.negf %164 : vector<8x128xf32>
    %166 = math.exp %165 : vector<8x128xf32>
    %cst_62 = arith.constant 1.000000e+00 : f32
    %167 = vector.broadcast %cst_62 : f32 to vector<8x128xf32>
    %168 = arith.addf %167, %166 : vector<8x128xf32>
    %169 = arith.divf %167, %168 : vector<8x128xf32>
    %170 = vector.extract_strided_slice %163 {offsets = [0, 128], sizes = [8, 128], strides = [1, 1]} : vector<8x512xf32> to vector<8x128xf32>
    %171 = arith.negf %170 : vector<8x128xf32>
    %172 = math.exp %171 : vector<8x128xf32>
    %cst_63 = arith.constant 1.000000e+00 : f32
    %173 = vector.broadcast %cst_63 : f32 to vector<8x128xf32>
    %174 = arith.addf %173, %172 : vector<8x128xf32>
    %175 = arith.divf %173, %174 : vector<8x128xf32>
    %176 = vector.extract_strided_slice %163 {offsets = [0, 256], sizes = [8, 128], strides = [1, 1]} : vector<8x512xf32> to vector<8x128xf32>
    %177 = math.tanh %176 : vector<8x128xf32>
    %178 = vector.extract_strided_slice %163 {offsets = [0, 384], sizes = [8, 128], strides = [1, 1]} : vector<8x512xf32> to vector<8x128xf32>
    %179 = arith.negf %178 : vector<8x128xf32>
    %180 = math.exp %179 : vector<8x128xf32>
    %cst_64 = arith.constant 1.000000e+00 : f32
    %181 = vector.broadcast %cst_64 : f32 to vector<8x128xf32>
    %182 = arith.addf %181, %180 : vector<8x128xf32>
    %183 = arith.divf %181, %182 : vector<8x128xf32>
    %184 = arith.mulf %175, %154 : vector<8x128xf32>
    %185 = arith.mulf %169, %177 : vector<8x128xf32>
    %186 = arith.addf %184, %185 : vector<8x128xf32>
    %187 = math.tanh %186 : vector<8x128xf32>
    %188 = arith.mulf %183, %187 : vector<8x128xf32>
    %c2_65 = arith.constant 2 : index
    %c0_66 = arith.constant 0 : index
    %c0_67 = arith.constant 0 : index
    %189 = vector.load %arg10[%c2_65, %c0_66, %c0_67] : memref<3x8x128xf32, #tpu.memory_space<vmem>>, vector<1x8x128xf32>
    %190 = vector.shape_cast %189 : vector<1x8x128xf32> to vector<8x128xf32>
    %191 = vector.shape_cast %188 : vector<8x128xf32> to vector<1x8x128xf32>
    tpu.vector_store %arg10[%c2_65, %c0_66, %c0_67], %191 {strides = array<i32>} : memref<3x8x128xf32, #tpu.memory_space<vmem>>, vector<1x8x128xf32>,
    %c2_68 = arith.constant 2 : index
    %c0_69 = arith.constant 0 : index
    %c0_70 = arith.constant 0 : index
    %192 = vector.load %arg11[%c2_68, %c0_69, %c0_70] : memref<3x8x128xf32, #tpu.memory_space<vmem>>, vector<1x8x128xf32>
    %193 = vector.shape_cast %192 : vector<1x8x128xf32> to vector<8x128xf32>
    %194 = vector.shape_cast %186 : vector<8x128xf32> to vector<1x8x128xf32>
    tpu.vector_store %arg11[%c2_68, %c0_69, %c0_70], %194 {strides = array<i32>} : memref<3x8x128xf32, #tpu.memory_space<vmem>>, vector<1x8x128xf32>,
    %195 = arith.truncf %188 : vector<8x128xf32> to vector<8x128xbf16>
    %c0_71 = arith.constant 0 : index
    %c0_72 = arith.constant 0 : index
    %196 = vector.load %arg5[%c0_71, %c0_72] : memref<128x256xbf16, #tpu.memory_space<vmem>>, vector<128x256xbf16>
    %cst_73 = arith.constant dense<0.000000e+00> : vector<8x256xf32>
    %197 = tpu.matmul %195, %196, %cst_73 {dimension_numbers = #tpu.dot_dimension_numbers<[1], [0], [0], [1], [0, 0, 1, 1], [], []>} : vector<8x128xbf16>, vector<128x256xbf16>, vector<8x256xf32> -> vector<8x256xf32>
    %c0_74 = arith.constant 0 : index
    %c0_75 = arith.constant 0 : index
    %198 = vector.load %arg6[%c0_74, %c0_75] : memref<1x256xf32, #tpu.memory_space<vmem>>, vector<1x256xf32>
    %199 = vector.broadcast %198 : vector<1x256xf32> to vector<8x256xf32>
    %200 = arith.addf %197, %199 : vector<8x256xf32>
    %c0_76 = arith.constant 0 : index
    %c0_77 = arith.constant 0 : index
    %c0_78 = arith.constant 0 : index
    %201 = vector.load %arg9[%c0_76, %c0_77, %c0_78] : memref<1x8x256xf32, #tpu.memory_space<vmem>>, vector<1x8x256xf32>
    %202 = vector.shape_cast %201 : vector<1x8x256xf32> to vector<8x256xf32>
    %203 = vector.shape_cast %200 : vector<8x256xf32> to vector<1x8x256xf32>
    tpu.vector_store %arg9[%c0_76, %c0_77, %c0_78], %203 {strides = array<i32>} : memref<1x8x256xf32, #tpu.memory_space<vmem>>, vector<1x8x256xf32>,
    return
  }
  func.func @transform_0(%arg0: i32, %arg1: memref<8x8xi32, #tpu.memory_space<smem>>) -> (i32, i32) {
    %c0_i32 = arith.constant 0 : i32
    %c0_i32_0 = arith.constant 0 : i32
    %c0_i32_1 = arith.constant 0 : i32
    return %c0_i32, %c0_i32_0 : i32, i32
  }
  func.func @transform_1(%arg0: i32, %arg1: memref<8x8xi32, #tpu.memory_space<smem>>) -> (i32, i32, i32) {
    %c0_i32 = arith.constant 0 : i32
    %c0_i32_0 = arith.constant 0 : i32
    %c0_i32_1 = arith.constant 0 : i32
    %c0_i32_2 = arith.constant 0 : i32
    return %c0_i32, %c0_i32_0, %c0_i32_1 : i32, i32, i32
  }
  func.func @transform_2(%arg0: i32, %arg1: memref<8x8xi32, #tpu.memory_space<smem>>) -> (i32, i32, i32) {
    %c0_i32 = arith.constant 0 : i32
    %c0_i32_0 = arith.constant 0 : i32
    %c0_i32_1 = arith.constant 0 : i32
    %c0_i32_2 = arith.constant 0 : i32
    return %c0_i32, %c0_i32_0, %c0_i32_1 : i32, i32, i32
  }
  func.func @transform_3(%arg0: i32, %arg1: memref<8x8xi32, #tpu.memory_space<smem>>) -> (i32, i32) {
    %c0_i32 = arith.constant 0 : i32
    %c0_i32_0 = arith.constant 0 : i32
    %c0_i32_1 = arith.constant 0 : i32
    return %c0_i32, %c0_i32_0 : i32, i32
  }
  func.func @transform_4(%arg0: i32, %arg1: memref<8x8xi32, #tpu.memory_space<smem>>) -> (i32, i32) {
    %c0_i32 = arith.constant 0 : i32
    %c0_i32_0 = arith.constant 0 : i32
    %c0_i32_1 = arith.constant 0 : i32
    return %c0_i32, %c0_i32_0 : i32, i32
  }
  func.func @transform_5(%arg0: i32, %arg1: memref<8x8xi32, #tpu.memory_space<smem>>) -> (i32, i32, i32) {
    %c0_i32 = arith.constant 0 : i32
    %c0_i32_0 = arith.constant 0 : i32
    %c0_i32_1 = arith.constant 0 : i32
    %c0_i32_2 = arith.constant 0 : i32
    return %c0_i32, %c0_i32_0, %c0_i32_1 : i32, i32, i32
  }
  func.func @transform_6(%arg0: i32, %arg1: memref<8x8xi32, #tpu.memory_space<smem>>) -> (i32, i32, i32) {
    %c0_i32 = arith.constant 0 : i32
    %c0_i32_0 = arith.constant 0 : i32
    %c0_i32_1 = arith.constant 0 : i32
    %c0_i32_2 = arith.constant 0 : i32
    return %c0_i32, %c0_i32_0, %c0_i32_1 : i32, i32, i32
  }
  func.func @transform_7(%arg0: i32, %arg1: memref<8x8xi32, #tpu.memory_space<smem>>) -> (i32, i32, i32) {
    %c0_i32 = arith.constant 0 : i32
    %c0_i32_0 = arith.constant 0 : i32
    %c0_i32_1 = arith.constant 0 : i32
    return %arg0, %c0_i32, %c0_i32_0 : i32, i32, i32
  }
  func.func @transform_8(%arg0: i32, %arg1: memref<8x8xi32, #tpu.memory_space<smem>>) -> (i32, i32, i32) {
    %c0_i32 = arith.constant 0 : i32
    %c0_i32_0 = arith.constant 0 : i32
    %c0_i32_1 = arith.constant 0 : i32
    %c0_i32_2 = arith.constant 0 : i32
    return %c0_i32, %c0_i32_0, %c0_i32_1 : i32, i32, i32
  }
  func.func @transform_9(%arg0: i32, %arg1: memref<8x8xi32, #tpu.memory_space<smem>>) -> (i32, i32, i32) {
    %c0_i32 = arith.constant 0 : i32
    %c0_i32_0 = arith.constant 0 : i32
    %c0_i32_1 = arith.constant 0 : i32
    %c0_i32_2 = arith.constant 0 : i32
    return %c0_i32, %c0_i32_0, %c0_i32_1 : i32, i32, i32
  }
}

</mosaic_0001>

<bundles_post_ra>
// kernel: decoder_forward.1
= control target key start
LH: loop header
LB: loop body
LE: loop exit
PB: predicated region body
PF: predicated region fallthrough
CT: control target
= control target key end

     0   :  { %s3999_s0 = inlined_call_operand.hbm [shape: s32[8,8], index: 0, kind: input, shape index: {}]   ;;  %s4000_s1 = inlined_call_operand.hbm [shape: bf16[256,128], index: 1, kind: input, shape index: {}]   ;;  %s4001_s2 = inlined_call_operand.hbm [shape: bf16[3,256,512], index: 2, kind: input, shape index: {}]   ;;  %s4002_s3 = inlined_call_operand.hbm [shape: f32[3,1,512], index: 3, kind: input, shape index: {}]   ;;  %s4003_s4 = inlined_call_operand.hbm [shape: bf16[128,256], index: 4, kind: input, shape index: {}]   ;;  %s4004_s5 = inlined_call_operand.vmem [shape: f32[1,256], index: 5, kind: input, shape index: {}]   ;;  %s4005_s6 = inlined_call_operand.hbm [shape: f32[3,8,128], index: 6, kind: input, shape index: {}]   ;;  %s4006_s7 = inlined_call_operand.vmem [shape: f32[3,8,128], index: 7, kind: input, shape index: {}]   ;;  %s4007_s8 = inlined_call_operand.hbm [shape: f32[8,8,256], index: 8, kind: output, shape index: {0}]   ;;  %s4008_s9 = inlined_call_operand.hbm [shape: f32[3,8,128], index: 9, kind: output, shape index: {1}]   ;;  %s4009_s10 = inlined_call_operand.hbm [shape: f32[3,8,128], index: 10, kind: output, shape index: {2}]  }
   0x1   :  { %4021 = sst [smem:[#allocation28_spill]] %s4001_s2  ;;  %s3274_s15 = scalar_lea.hbm %s3999_s0, 128 }
   0x2   :  { %4022 = sst [smem:[#allocation29_spill]] %s4003_s4  ;;  %p3275_p0 = scmp.ne.s32.totalorder %s3999_s0, %s3274_s15 }
   0x3   :  { %p3278_p1 = scmp.lt.u32.totalorder %s3274_s15, %s3999_s0 }
   0x5   :  { %p3280_p2 = pnand %p3278_p1, %p3275_p0 }
   0x7   :  { %3283 = shalt.err (!%p3280_p2)  }
   0x8   :  { %s3558_s20 = smov [#allocation3]  }
   0x9   :  { %17 = dma.hbm_to_smem %s3999_s0, 128, %s3558_s20, [#allocation2] }
   0xa   :  { %3520 = dma.done.wait [#allocation2], 128 }
   0xb   :  { %3521 = vsyncadd [#allocation2], 4294967168 }
   0xc   :  { %19 = sfence }
   0xd   :  { %20 = vsyncpa [#allocation5], 0 }
   0xe   :  { %21 = vsyncpa [#allocation8], 0 }
   0xf   :  { %22 = vsyncpa [#allocation11], 0 }
  0x10   :  { %23 = vsyncpa [#allocation6], 0 }
  0x11   :  { %25 = vsyncpa [#allocation6 + $0x1], 0 }
  0x12   :  { %26 = vsyncpa [#allocation15], 0  ;;  %s3644_s23 = smov 0   ;;  %s3646_s24 = smov 0  }
  0x13   :  { %s3648_s25 = smov 0   ;;  %s3650_s26 = smov 0  }
  0x14 LB: > { %4023 = sst [smem:[#allocation23_spill]] %s3544_s23  ;;  %s3665_s0 = sadd.s32 4294967295, %s3556_s26   ;;  %s3556_s26 = sphi %s3650_s26, %s4057_s26   ;;  %s3552_s25 = sphi %s3648_s25, %s4059_s25   ;;  %s3548_s24 = sphi %s3646_s24, %s4061_s24   ;;  %s3544_s23 = sphi %s3644_s23, %s4060_s23  }
  0x15   : > { %4024 = sst [smem:[#allocation24_spill]] %s3552_s25  ;;  %s2496_s27 = sadd.s32 4294967294, %s3556_s26  }
  0x16   : > { %s3669_s28 = sadd.s32 1, %s3556_s26   ;;  %s186_s29 = sadd.s32 1, %s3552_s25 }
  0x17   : > { %4025 = sst [smem:[#allocation25_spill]] %s3669_s28  ;;  %s183_s30 = ssub.s32 %s3556_s26, %s3669_s28 }
  0x18   : > { %p196_p3 = scmp.ne.s32.totalorder %s3552_s25, %s3548_s24  ;;  %p184_p4 = scmp.eq.s32.totalorder %s183_s30, 0 }
  0x19   : > { %p4010_p5 = scmp.eq.s32.totalorder %s3665_s0, 7  ;;  %p202_p6 = scmp.ne.s32.totalorder %s3548_s24, %s3544_s23 }
  0x1a   : > { %p203_p7 = scmp.eq.s32.totalorder %s2496_s27, 7  ;;  %p2497_p10 = scmp.ge.s32.totalorder %s3556_s26, 1 }
  0x1b   : > { %s3680_s11 = scalar_select %p184_p4, %s3552_s25, %s186_s29  }
  0x1c   : > { %p3684_p8 = por %p4010_p5, %p196_p3  ;;  %p3688_p9 = por %p203_p7, %p202_p6 }
  0x1d   : > { %4026 = sst [smem:[#allocation26_spill]] %s3680_s11  ;;  %p252_p11 = scmp.lt.s32.totalorder %s3556_s26, 9 }
  0x1e   : > { %s4027_s12 = scalar_select %p3684_p8, 1, 0 }
  0x1f   : > { %s4028_s13 = scalar_select %p3688_p9, 1, 0 }
  0x20   : > { %p4011_p13 = scmp.eq.s32.totalorder %s3665_s0, 0  ;;  %p3696_p0 = pnand %p2497_p10, %p252_p11 }
  0x21   : > { %4029 = sst [smem:[#allocation27_spill]] %s4028_s13  ;;  %s3559_s15 = smov [#allocation7]  }
  0x22   : > { %s4030_s14 = scalar_select %p3696_p0, 1, 0 }
  0x23   : > { %s277_s16 = sshll.u32 %s3559_s15, 4  ;;  %p2813_p1 = pneg %p3696_p0  ;;  %s278_s16 = int_to_ptr.vmem [resolvable:$true] %s277_s16 }
  0x24   : > { %s3560_s18 = smov [#allocation10]   ;;  %s4032_s2 = sld [smem:[#allocation28_spill]] }
  0x25   : > { %p3704_p2 = pnand %p4011_p13, %p2813_p1  ;;  %s303_s19 = sshll.u32 %s3560_s18, 4  ;;  %s3708_s19 = int_to_ptr.vmem [resolvable:$true] %s303_s19 }
  0x27   : > { %p3718_p4 = pneg %p3704_p2 }
  0x2a   : > { %s3284_s22 = scalar_lea.hbm %s4032_s2, 24576 }
  0x2b   : > { %p3285_p3 = scmp.ne.s32.totalorder %s4032_s2, %s3284_s22  ;;  %p3291_p10 = scmp.lt.u32.totalorder %s3284_s22, %s4032_s2 }
  0x2d   : > { %p3287_p6 = pnand %p3718_p4, %p3285_p3 }
  0x2f   : > { %p3288_p7 = pneg %p3287_p6 }
  0x31   : > { %p3293_p11 = pnand %p3291_p10, %p3288_p7 }
  0x33   : > { %3296 = shalt.err (!%p3293_p11)
}
  0x34   : > { %s3297_s20 = scalar_lea.vmem %s278_s16, 24576  ;;  %p3305_p13 = scmp.lt.s32.totalorder %s278_s16, %s278_s16 }
  0x35   : > { %p3298_p1 = scmp.ne.s32.totalorder %s278_s16, %s3297_s20  ;;  %p3306_p9 = scmp.lt.s32.totalorder %s3297_s20, %s3297_s20 }
  0x37   : > { %p3300_p5 = pnand %p3298_p1, %p3718_p4  ;;  %p3307_p8 = por %p3306_p9, %p3305_p13 }
  0x39   : > { %p3301_p12 = pneg %p3300_p5 }
  0x3b   : > { %p3308_p0 = pnand %p3307_p8, %p3301_p12 }
  0x3d   : > { %3311 = shalt.err (!%p3308_p0)
}
  0x3e   : > { %s3561_s21 = smov 256   ;;  %s3562_s27 = smov 16  }
  0x3f   : > { %2819 = dma.hbm_to_vmem [thread:$0]  (!%p3704_p2), %s4032_s2, 24576, %s278_s16, [#allocation8], %s3561_s21, %s3561_s21, %s3562_s27  }
  0x40   : > { %s4034_s4 = sld [smem:[#allocation29_spill]] }
  0x46   : > { %s3312_s11 = scalar_lea.hbm %s4034_s4, 2048 }
  0x47   : > { %p3313_p5 = scmp.ne.s32.totalorder %s4034_s4, %s3312_s11  ;;  %p3319_p12 = scmp.lt.u32.totalorder %s3312_s11, %s4034_s4 }
  0x49   : > { %p3315_p8 = pnand %p3313_p5, %p3718_p4 }
  0x4b   : > { %p3316_p9 = pneg %p3315_p8 }
  0x4d   : > { %p3321_p13 = pnand %p3319_p12, %p3316_p9 }
  0x4f   : > { %3324 = shalt.err (!%p3321_p13)
}
  0x50   : > { %s3325_s16 = scalar_lea.vmem %s3708_s19, 2048  ;;  %p3333_p7 = scmp.lt.s32.totalorder %s3708_s19, %s3708_s19 }
  0x51   : > { %p3326_p0 = scmp.ne.s32.totalorder %s3708_s19, %s3325_s16  ;;  %p3334_p10 = scmp.lt.s32.totalorder %s3325_s16, %s3325_s16 }
  0x53   : > { %p3328_p3 = pnand %p3326_p0, %p3718_p4  ;;  %p3335_p11 = por %p3334_p10, %p3333_p7 }
  0x55   : > { %p3329_p6 = pneg %p3328_p3 }
  0x57   : > { %p3336_p1 = pnand %p3335_p11, %p3329_p6 }
  0x59   : > { %3339 = shalt.err (!%p3336_p1)
}
  0x5a   : > { %s4018_s25 = smov 128   ;;  %s4019_s28 = smov 8  }
  0x5b   : > { %2825 = dma.hbm_to_vmem [thread:$0]  (!%p3704_p2), %s4034_s4, 2048, %s3708_s19, [#allocation11], %s4018_s25, %s4018_s25, %s4019_s28  }
  0x5c   : > { %s3565_s21 = smov [#allocation4]   ;;  %s3340_s15 = scalar_lea.hbm %s4000_s1, 2048 }
  0x5d   : > { %s264_s27 = sshll.u32 %s3565_s21, 4  ;;  %p3341_p5 = scmp.ne.s32.totalorder %s4000_s1, %s3340_s15  ;;  %s265_s27 = int_to_ptr.vmem [resolvable:$true] %s264_s27 }
  0x5e   : > { %p3347_p12 = scmp.lt.u32.totalorder %s3340_s15, %s4000_s1 }
  0x5f   : > { %p3343_p8 = pnand %p3341_p5, %p3718_p4 }
  0x61   : > { %p3344_p9 = pneg %p3343_p8 }
  0x63   : > { %p3349_p13 = pnand %p3347_p12, %p3344_p9 }
  0x65   : > { %3352 = shalt.err (!%p3349_p13)
}
  0x66   : > { %s3353_s19 = scalar_lea.vmem %s265_s27, 2048  ;;  %p3361_p7 = scmp.lt.s32.totalorder %s265_s27, %s265_s27 }
  0x67   : > { %p3354_p0 = scmp.ne.s32.totalorder %s265_s27, %s3353_s19  ;;  %p3362_p10 = scmp.lt.s32.totalorder %s3353_s19, %s3353_s19 }
  0x69   : > { %p3356_p3 = pnand %p3354_p0, %p3718_p4  ;;  %p3363_p11 = por %p3362_p10, %p3361_p7 }
  0x6b   : > { %p3357_p6 = pneg %p3356_p3 }
  0x6d   : > { %p3364_p1 = pnand %p3363_p11, %p3357_p6 }
  0x6f   : > { %3367 = shalt.err (!%p3364_p1)
}
  0x70   : > { %s3566_s11 = smov 64   ;;  %s3567_s13 = smov 4  }
  0x71   : > { %2816 = dma.hbm_to_vmem [thread:$0]  (!%p3704_p2), %s4000_s1, 2048, %s265_s27, [#allocation5], %s3566_s11, %s3566_s11, %s3567_s13  }
  0x72   : > { %s3568_s29 = smov [#allocation9]   ;;  %s3569_s15 = smov [#allocation12]  }
  0x73   : > { %s290_s22 = sshll.u32 %s3568_s29, 4  ;;  %s319_s18 = sshll.u32 %s3569_s15, 4  ;;  %s291_s22 = int_to_ptr.vmem [resolvable:$true] %s290_s22  ;;  %s320_s18 = int_to_ptr.vmem [resolvable:$true] %s319_s18 }
  0x74   : > { %s3368_s19 = scalar_lea.hbm %s4002_s3, 192 }
  0x75   : > { %p3369_p5 = scmp.ne.s32.totalorder %s4002_s3, %s3368_s19  ;;  %p3375_p12 = scmp.lt.u32.totalorder %s3368_s19, %s4002_s3 }
  0x77   : > { %p3371_p8 = pnand %p3369_p5, %p3718_p4 }
  0x79   : > { %p3372_p9 = pneg %p3371_p8 }
  0x7b   : > { %p3377_p13 = pnand %p3375_p12, %p3372_p9 }
  0x7d   : > { %3380 = shalt.err (!%p3377_p13)
}
  0x7e   : > { %s3381_s27 = scalar_lea.vmem %s291_s22, 192  ;;  %p3389_p7 = scmp.lt.s32.totalorder %s291_s22, %s291_s22 }
  0x7f   : > { %p3382_p0 = scmp.ne.s32.totalorder %s291_s22, %s3381_s27  ;;  %p3390_p10 = scmp.lt.s32.totalorder %s3381_s27, %s3381_s27 }
  0x81   : > { %p3384_p3 = pnand %p3382_p0, %p3718_p4  ;;  %p3391_p11 = por %p3390_p10, %p3389_p7 }
  0x83   : > { %p3385_p6 = pneg %p3384_p3 }
  0x85   : > { %p3392_p1 = pnand %p3391_p11, %p3385_p6 }
  0x87   : > { %3395 = shalt.err (!%p3392_p1)
}
  0x88   : > { %2822 = dma.hbm_to_vmem [thread:$0]  (!%p3704_p2), %s4002_s3, 192, %s291_s22, [#allocation8], %s3566_s11, %s3566_s11, %s3567_s13  }
  0x89   : > { %s3396_s2 = scalar_lea.hbm %s4005_s6, 384 }
  0x8a   : > { %p3397_p5 = scmp.ne.s32.totalorder %s4005_s6, %s3396_s2  ;;  %p3403_p12 = scmp.lt.u32.totalorder %s3396_s2, %s4005_s6 }
  0x8c   : > { %p3399_p8 = pnand %p3397_p5, %p3718_p4 }
  0x8e   : > { %p3400_p9 = pneg %p3399_p8 }
  0x90   : > { %p3405_p13 = pnand %p3403_p12, %p3400_p9 }
  0x92   : > { %3408 = shalt.err (!%p3405_p13)
}
  0x93   : > { %s3409_s16 = scalar_lea.vmem %s320_s18, 384  ;;  %p3417_p7 = scmp.lt.s32.totalorder %s320_s18, %s320_s18 }
  0x94   : > { %p3410_p0 = scmp.ne.s32.totalorder %s320_s18, %s3409_s16  ;;  %p3418_p10 = scmp.lt.s32.totalorder %s3409_s16, %s3409_s16 }
  0x96   : > { %p3412_p3 = pnand %p3410_p0, %p3718_p4  ;;  %p3419_p11 = por %p3418_p10, %p3417_p7 }
  0x98   : > { %p3413_p6 = pneg %p3412_p3 }
  0x9a   : > { %p3420_p1 = pnand %p3419_p11, %p3413_p6 }
  0x9c   : > { %3423 = shalt.err (!%p3420_p1)
}
  0x9d   : > { %s4035_s11 = smov 8   ;;  %s4036_s13 = smov 128  }
  0x9e   : > { %2828 = dma.hbm_to_vmem [thread:$0]  (!%p3704_p2), %s4005_s6, 384, %s320_s18, [#allocation11], %s4036_s13, %s4036_s13, %s4035_s11  }
  0x9f   : > { %p4037_p5 = scmp.ne.s32.totalorder %s4030_s14, 0 }
  0xa0   : > { %p4038_p4 = scmp.eq.s32.totalorder (!%p4037_p5), %s3665_s0, 0 }
  0xa1   : > { %338 = sbr.rel (%p4037_p5) target bundleno = 1448 (0x5a8), region = 48 }
  0xa8   : > { %3523 = dma.done.wait (%p4038_p4), [#allocation5], 2048   ;;  %p4039_p8 = pmov %p4038_p4 }
  0xa9   : > { %p4040_p9 = pmov %p4038_p4 }
  0xaa   : > { %3525 = vsyncadd (%p4039_p8), [#allocation5], 4294965248 }
  0xab   : > { %3527 = dma.done.wait (%p4040_p9), [#allocation8], 24768   ;;  %p4041_p12 = pmov %p4038_p4 }
  0xac   : > { %p4042_p13 = pmov %p4038_p4 }
  0xad   : > { %3529 = vsyncadd (%p4041_p12), [#allocation8], 4294942528 }
  0xae   : > { %3531 = dma.done.wait (%p4042_p13), [#allocation11], 2432   ;;  %p4043_p2 = pmov %p4038_p4 }
  0xaf   : > { %s378_s14 = sand.u32 1, %s3548_s24   ;;  %p4044_p0 = scmp.ne.s32.totalorder %s3665_s0, 0 }
  0xb0   : > { %3533 = vsyncadd (%p4043_p2), [#allocation11], 4294964864  ;;  %s2509_s17 = sshll.u32 %s378_s14, 4  ;;  %v390_v0 = vld [vmem:[#allocation12] sm:$0xff] (!%p4044_p0)  ;;  %v391_v1 = vld [vmem:[#allocation12 + $0x8] sm:$0xff] (!%p4044_p0) }
  0xb1   : > { %s3834_s30 = scalar_lea.vmem [#allocation13], %s2509_s17  ;;  %389 = sbr.rel (%p4044_p0) target bundleno = 184 (0xb8), region = 72  ;;  %v392_v2 = vld [vmem:[#allocation12 + $0x10] sm:$0xff] (!%p4044_p0)  ;;  %393 = vst [vmem:[#allocation14] sm:$0xff] (!%p4044_p0), %v390_v0  ;;  %394 = vst [vmem:[#allocation14 + $0x8] sm:$0xff] (!%p4044_p0), %v391_v1  ;;  %v396_v3 = vld [vmem:[%s4006_s7] sm:$0xff] (!%p4044_p0) }
  0xb2   : > { %395 = vst [vmem:[#allocation14 + $0x10] sm:$0xff] (!%p4044_p0), %v392_v2  ;;  %v397_v4 = vld [vmem:[%s4006_s7 + $0x8] sm:$0xff] (!%p4044_p0)  ;;  %v398_v5 = vld [vmem:[%s4006_s7 + $0x10] sm:$0xff] (!%p4044_p0)  ;;  %399 = vst [vmem:[#allocation16] sm:$0xff] (!%p4044_p0), %v396_v3 }
  0xb3   : > { %400 = vst [vmem:[#allocation16 + $0x8] sm:$0xff] (!%p4044_p0), %v397_v4  ;;  %401 = vst [vmem:[#allocation16 + $0x10] sm:$0xff] (!%p4044_p0), %v398_v5 }
  0xb8 PF: > { %v2898_v6 = vld [vmem:[#allocation4 + $0x40] sm:$0xff]   ;;  %s3848_s2 = sshll.u32 %s3665_s0, 7  ;;  %v2900_v8 = vld [vmem:[#allocation4 + $0x48] sm:$0xff]   ;;  %v402_v9 = vlaneseq  ;;  %v2902_v11 = vld [vmem:[#allocation4 + $0x50] sm:$0xff]   ;;  %v3570_v50 = vmov 1.0|1.0  }
  0xb9   : > { %v2899_v7 = vld [vmem:[#allocation4] sm:$0xff]   ;;  %2761 = vmatprep.subr.bf16.mxu0 %v2898_v6  ;;  %s409_s21 = sld [smem:[#allocation3 + %s3848_s2]]  ;;  %v2901_v10 = vld [vmem:[#allocation4 + $0x8] sm:$0xff]   ;;  %v2903_v13 = vld [vmem:[#allocation4 + $0x10] sm:$0xff]   ;;  %s413_s29 = sadd.s32 1, %s3848_s2 }
  0xba   : > { %2762 = vmatpush3.bf16.msra.mxu0 %v2899_v7  ;;  %v3851_v12 = vshrl.u32 %v402_v9, 7  ;;  %v2904_v14 = vld [vmem:[#allocation4 + $0x58] sm:$0xff]   ;;  %s414_s15 = sld [smem:[#allocation3 + %s413_s29]]  ;;  %s418_s20 = sadd.s32 2, %s3848_s2  ;;  %v2906_v17 = vld [vmem:[#allocation4 + $0x60] sm:$0xff]   ;;  %v2908_v21 = vld [vmem:[#allocation4 + $0x68] sm:$0xff]  }
  0xbb   : > { %2763 = vmatprep.subr.bf16.mxu0 %v2900_v8  ;;  %v2905_v16 = vld [vmem:[#allocation4 + $0x18] sm:$0xff]   ;;  %s419_s16 = sld [smem:[#allocation3 + %s418_s20]]  ;;  %s423_s11 = sadd.s32 3, %s3848_s2  ;;  %v2907_v19 = vld [vmem:[#allocation4 + $0x20] sm:$0xff]   ;;  %v2909_v25 = vld [vmem:[#allocation4 + $0x28] sm:$0xff]   ;;  %v405_v28 = vand.u32 127, %v402_v9 }
  0xbc   : > { %vm407_vm0 = vcmp.eq.s32.totalorder %v3851_v12, 0  ;;  %vm412_vm1 = vcmp.eq.s32.totalorder %v3851_v12, 1  ;;  %s424_s13 = sld [smem:[#allocation3 + %s423_s11]]  ;;  %vm417_vm2 = vcmp.eq.s32.totalorder %v3851_v12, 2  ;;  %s428_s22 = sadd.s32 4, %s3848_s2  ;;  %v2910_v26 = vld [vmem:[#allocation4 + $0x70] sm:$0xff]  }
  0xbd   : > { %s433_s19 = sadd.s32 5, %s3848_s2  ;;  %s3861_s17 = sld [smem:[#allocation3 + %s428_s22]]  ;;  %v2914_v24 = vld [vmem:[#allocation7 + $0x4] ss:$16 sps:$4 sm:$0xff]   ;;  %vm422_vm3 = vcmp.eq.s32.totalorder %v3851_v12, 3  ;;  %vm427_vm4 = vcmp.eq.s32.totalorder %v3851_v12, 4 }
  0xbe   : > { %2764 = vmatpush3.bf16.msra.mxu0 %v2901_v10  ;;  %s3863_s18 = sld [smem:[#allocation3 + %s433_s19]]  ;;  %s438_s27 = sadd.s32 6, %s3848_s2  ;;  %1033 = vmatprep.subr.bf16.mxu1 %v2914_v24  ;;  %v2919_v29 = vld [vmem:[#allocation7] ss:$16 sps:$4 sm:$0xff]   ;;  %v2920_v31 = vld [vmem:[#allocation7 + $0x24] ss:$16 sps:$4 sm:$0xff]  }
  0xbf   : > { %2765 = vmatprep.subr.bf16.mxu0 %v2902_v11  ;;  %v410_v15 = vstv %s409_s21  ;;  %s443_s25 = sadd.s32 7, %s3848_s2  ;;  %s439_s28 = sld [smem:[#allocation3 + %s438_s27]]  ;;  %v2911_v32 = vld [vmem:[#allocation4 + $0x30] sm:$0xff]   ;;  %vm432_vm5 = vcmp.eq.s32.totalorder %v3851_v12, 5  ;;  %1034 = vmatpush1.bf16.msra.mxu1 %v2919_v29  ;;  %vm437_vm6 = vcmp.eq.s32.totalorder %v3851_v12, 6  ;;  %v2912_v38 = vld [vmem:[#allocation4 + $0x78] sm:$0xff]  }
  0xc0   : > { %v411_v18 = vsel %vm407_vm0, %v410_v15, 0  ;;  %v415_v20 = vstv %s414_s15  ;;  %s3868_s4 = sld [smem:[#allocation3 + %s443_s25]]  ;;  %v2925_v34 = vld [vmem:[#allocation7 + $0x20] ss:$16 sps:$4 sm:$0xff]   ;;  %1035 = vmatprep.subr.bf16.mxu1 %v2920_v31  ;;  %v2926_v37 = vld [vmem:[#allocation7 + $0x44] ss:$16 sps:$4 sm:$0xff]  }
  0xc1   : > { %v416_v22 = vsel %vm412_vm1, %v415_v20, %v411_v18  ;;  %v420_v23 = vstv %s419_s16  ;;  %v406_v39 = vadd.s32 128, %v405_v28  ;;  %vm442_vm7 = vcmp.eq.s32.totalorder %v3851_v12, 7  ;;  %v2931_v45 = vld [vmem:[#allocation7 + $0x40] ss:$16 sps:$4 sm:$0xff]   ;;  %v2913_v46 = vld [vmem:[#allocation4 + $0x38] sm:$0xff]   ;;  %s3572_s23 = smov [#allocation14]  }
  0xc2   : > { %2766 = vmatpush3.bf16.msra.mxu0 %v2903_v13  ;;  %v421_v27 = vsel %vm417_vm2, %v420_v23, %v416_v22  ;;  %v425_v30 = vstv %s424_s13  ;;  %v2932_v48 = vld [vmem:[#allocation7 + $0x64] ss:$16 sps:$4 sm:$0xff]   ;;  %v2918_v49 = vld [vmem:[#allocation7 + $0xc] ss:$16 sps:$4 sm:$0xff]   ;;  %v2916_v51 = vld [vmem:[#allocation7 + $0x8] ss:$16 sps:$4 sm:$0xff]  }
  0xc3   : > { %2767 = vmatprep.subr.bf16.mxu0 %v2904_v14  ;;  %v426_v33 = vsel %vm422_vm3, %v425_v30, %v421_v27  ;;  %v430_v35 = vstv %s3861_s17  ;;  %1036 = vmatpush1.bf16.msra.mxu1 %v2925_v34  ;;  %v2937_v52 = vld [vmem:[#allocation7 + $0x60] ss:$16 sps:$4 sm:$0xff]   ;;  %v2938_v53 = vld [vmem:[#allocation7 + $0x84] ss:$16 sps:$4 sm:$0xff]   ;;  %v2924_v54 = vld [vmem:[#allocation7 + $0x2c] ss:$16 sps:$4 sm:$0xff]  }
  0xc4   : > { %v435_v36 = vstv %s3863_s18  ;;  %v431_v40 = vsel %vm427_vm4, %v430_v35, %v426_v33  ;;  %1037 = vmatprep.subr.bf16.mxu1 %v2926_v37  ;;  %v2922_v55 = vld [vmem:[#allocation7 + $0x28] ss:$16 sps:$4 sm:$0xff]   ;;  %v2943_v56 = vld [vmem:[#allocation7 + $0x80] ss:$16 sps:$4 sm:$0xff]   ;;  %v2944_v57 = vld [vmem:[#allocation7 + $0xa4] ss:$16 sps:$4 sm:$0xff]  }
  0xc5   : > { %v436_v41 = vsel %vm432_vm5, %v435_v36, %v431_v40  ;;  %v440_v42 = vstv %s439_s28  ;;  %v2930_v58 = vld [vmem:[#allocation7 + $0x4c] ss:$16 sps:$4 sm:$0xff]   ;;  %v2949_v59 = vld [vmem:[#allocation7 + $0xa0] ss:$16 sps:$4 sm:$0xff]   ;;  %v2928_v60 = vld [vmem:[#allocation7 + $0x48] ss:$16 sps:$4 sm:$0xff]  }
  0xc6   : > { %2768 = vmatpush3.bf16.msra.mxu0 %v2905_v16  ;;  %v445_v43 = vstv %s3868_s4  ;;  %v441_v44 = vsel %vm437_vm6, %v440_v42, %v436_v41  ;;  %v2950_v61 = vld [vmem:[#allocation7 + $0xc4] ss:$16 sps:$4 sm:$0xff]   ;;  %v2936_v62 = vld [vmem:[#allocation7 + $0x6c] ss:$16 sps:$4 sm:$0xff]   ;;  %v2934_v63 = vld [vmem:[#allocation7 + $0x68] ss:$16 sps:$4 sm:$0xff]  }
  0xc7   : > { %2769 = vmatprep.subr.bf16.mxu0 %v2906_v17  ;;  %v446_v47 = vsel %vm442_vm7, %v445_v43, %v441_v44  ;;  %1038 = vmatpush1.bf16.msra.mxu1 %v2931_v45  ;;  %v2955_v0 = vld [vmem:[#allocation7 + $0xc0] ss:$16 sps:$4 sm:$0xff]   ;;  %v2956_v1 = vld [vmem:[#allocation7 + $0xe4] ss:$16 sps:$4 sm:$0xff]   ;;  %v2942_v2 = vld [vmem:[#allocation7 + $0x8c] ss:$16 sps:$4 sm:$0xff]  }
  0xc8   : > { %vm447_vm8 = vcmp.eq.s32.totalorder %v405_v28, %v446_v47  ;;  %vm448_vm9 = vcmp.eq.s32.totalorder %v406_v39, %v446_v47  ;;  %1039 = vmatprep.subr.bf16.mxu1 %v2932_v48  ;;  %v2961_v3 = vld [vmem:[#allocation7 + $0xe0] ss:$16 sps:$4 sm:$0xff]   ;;  %v2940_v4 = vld [vmem:[#allocation7 + $0x88] ss:$16 sps:$4 sm:$0xff]   ;;  %v2962_v5 = vld [vmem:[#allocation7 + $0x104] ss:$16 sps:$4 sm:$0xff]  }
  0xc9   : > { %vm2530_vm10 = vmpackc.low %vm448_vm9, %vm448_vm9  ;;  %v2948_v6 = vld [vmem:[#allocation7 + $0xac] ss:$16 sps:$4 sm:$0xff]   ;;  %v2946_v7 = vld [vmem:[#allocation7 + $0xa8] ss:$16 sps:$4 sm:$0xff]   ;;  %s2362_s2 = sshll.u32 %s3572_s23, 4  ;;  %p4045_p6 = scmp.eq.s32.totalorder %s3665_s0, 7  ;;  %s2363_s2 = int_to_ptr.vmem [resolvable:$true] %s2362_s2 }
  0xca   : > { %2770 = vmatpush3.bf16.msra.mxu0 %v2907_v19  ;;  %2531 = vmatprep.mubr.msk.bf16.mxu0 %vm2530_vm10, %v3570_v50  ;;  %vm2532_vm11 = vmpackc.low %vm447_vm8, %vm447_vm8  ;;  %v2967_v8 = vld [vmem:[#allocation7 + $0x100] ss:$16 sps:$4 sm:$0xff]   ;;  %v2968_v9 = vld [vmem:[#allocation7 + $0x124] ss:$16 sps:$4 sm:$0xff]   ;;  %s3424_s21 = scalar_lea.vmem %s2363_s2, 384  ;;  %p3431_p11 = scmp.lt.s32.totalorder %s2363_s2, %s2363_s2 }
  0xcb   : > { %2771 = vmatprep.subr.bf16.mxu0 %v2908_v21  ;;  %1040 = vmatpush1.bf16.msra.mxu1 %v2937_v52  ;;  %v2954_v10 = vld [vmem:[#allocation7 + $0xcc] ss:$16 sps:$4 sm:$0xff]   ;;  %v2973_v11 = vld [vmem:[#allocation7 + $0x120] ss:$16 sps:$4 sm:$0xff]   ;;  %v2952_v13 = vld [vmem:[#allocation7 + $0xc8] ss:$16 sps:$4 sm:$0xff]   ;;  %p3425_p3 = scmp.ne.s32.totalorder %s2363_s2, %s3424_s21  ;;  %p3432_p1 = scmp.lt.s32.totalorder %s3424_s21, %s3424_s21 }
  0xcc   : > { %1041 = vmatprep.subr.bf16.mxu1 %v2938_v53  ;;  %v2974_v14 = vld [vmem:[#allocation7 + $0x144] ss:$16 sps:$4 sm:$0xff]   ;;  %v2960_v15 = vld [vmem:[#allocation7 + $0xec] ss:$16 sps:$4 sm:$0xff]   ;;  %v2958_v16 = vld [vmem:[#allocation7 + $0xe8] ss:$16 sps:$4 sm:$0xff]  }
  0xcd   : > { %v2979_v17 = vld [vmem:[#allocation7 + $0x140] ss:$16 sps:$4 sm:$0xff]   ;;  %v2966_v18 = vld [vmem:[#allocation7 + $0x10c] ss:$16 sps:$4 sm:$0xff]   ;;  %v2980_v19 = vld [vmem:[#allocation7 + $0x164] ss:$16 sps:$4 sm:$0xff]   ;;  %p3426_p7 = pnand %p3425_p3, %p4045_p6  ;;  %p3433_p5 = por %p3432_p1, %p3431_p11 }
  0xce   : > { %2772 = vmatpush3.bf16.msra.mxu0 %v2909_v25  ;;  %v2985_v20 = vld [vmem:[#allocation7 + $0x160] ss:$16 sps:$4 sm:$0xff]   ;;  %v2964_v21 = vld [vmem:[#allocation7 + $0x108] ss:$16 sps:$4 sm:$0xff]   ;;  %v2986_v22 = vld [vmem:[#allocation7 + $0x184] ss:$16 sps:$4 sm:$0xff]  }
  0xcf   : > { %2773 = vmatprep.subr.bf16.mxu0 %v2910_v26  ;;  %1042 = vmatpush1.bf16.msra.mxu1 %v2943_v56  ;;  %v2972_v23 = vld [vmem:[#allocation7 + $0x12c] ss:$16 sps:$4 sm:$0xff]   ;;  %v2991_v24 = vld [vmem:[#allocation7 + $0x180] ss:$16 sps:$4 sm:$0xff]   ;;  %v2970_v25 = vld [vmem:[#allocation7 + $0x128] ss:$16 sps:$4 sm:$0xff]   ;;  %p3427_p10 = pneg %p3426_p7 }
  0xd0   : > { %1043 = vmatprep.subr.bf16.mxu1 %v2944_v57  ;;  %v2992_v26 = vld [vmem:[#allocation7 + $0x1a4] ss:$16 sps:$4 sm:$0xff]   ;;  %v2978_v27 = vld [vmem:[#allocation7 + $0x14c] ss:$16 sps:$4 sm:$0xff]   ;;  %v2997_v28 = vld [vmem:[#allocation7 + $0x1a0] ss:$16 sps:$4 sm:$0xff]  }
  0xd1   : > { %v2976_v29 = vld [vmem:[#allocation7 + $0x148] ss:$16 sps:$4 sm:$0xff]   ;;  %v2998_v30 = vld [vmem:[#allocation7 + $0x1c4] ss:$16 sps:$4 sm:$0xff]   ;;  %v2984_v31 = vld [vmem:[#allocation7 + $0x16c] ss:$16 sps:$4 sm:$0xff]   ;;  %p3434_p4 = pnand %p3433_p5, %p3427_p10 }
  0xd2   : > { %2774 = vmatpush3.bf16.msra.mxu0 %v2911_v32  ;;  %v3003_v32 = vld [vmem:[#allocation7 + $0x1c0] ss:$16 sps:$4 sm:$0xff]   ;;  %v2982_v33 = vld [vmem:[#allocation7 + $0x168] ss:$16 sps:$4 sm:$0xff]   ;;  %v2990_v34 = vld [vmem:[#allocation7 + $0x18c] ss:$16 sps:$4 sm:$0xff]  }
  0xd3   : > { %2775 = vmatprep.subr.bf16.mxu0 %v2912_v38  ;;  %1044 = vmatpush1.bf16.msra.mxu1 %v2949_v59  ;;  %v2988_v35 = vld [vmem:[#allocation7 + $0x188] ss:$16 sps:$4 sm:$0xff]   ;;  %v2996_v36 = vld [vmem:[#allocation7 + $0x1ac] ss:$16 sps:$4 sm:$0xff]   ;;  %v3004_v40 = vld [vmem:[#allocation7 + $0x1e4] ss:$16 sps:$4 sm:$0xff]  }
  0xd4   : > { %1045 = vmatprep.subr.bf16.mxu1 %v2950_v61  ;;  %v2994_v37 = vld [vmem:[#allocation7 + $0x1a8] ss:$16 sps:$4 sm:$0xff]   ;;  %v3002_v38 = vld [vmem:[#allocation7 + $0x1cc] ss:$16 sps:$4 sm:$0xff]   ;;  %v3009_v43 = vld [vmem:[#allocation7 + $0x1e0] ss:$16 sps:$4 sm:$0xff]  }
  0xd5   : > { %v3000_v39 = vld [vmem:[#allocation7 + $0x1c8] ss:$16 sps:$4 sm:$0xff]   ;;  %v3008_v41 = vld [vmem:[#allocation7 + $0x1ec] ss:$16 sps:$4 sm:$0xff]   ;;  %v3010_v53 = vld [vmem:[#allocation7 + $0x200] ss:$16 sps:$4 sm:$0xff]  }
  0xd6   : > { %2776 = vmatpush3.bf16.msra.mxu0 %v2913_v46  ;;  %v3006_v42 = vld [vmem:[#allocation7 + $0x1e8] ss:$16 sps:$4 sm:$0xff]   ;;  %v3012_v46 = vld [vmem:[#allocation7 + $0x204] ss:$16 sps:$4 sm:$0xff]   ;;  %v3015_v47 = vld [vmem:[#allocation7 + $0x20c] ss:$16 sps:$4 sm:$0xff]  }
  0xd7   : > { %1074 = vmatprep.subr.bf16.mxu0 %v2918_v49  ;;  %1046 = vmatpush1.bf16.msra.mxu1 %v2955_v0  ;;  %v624_v44 = vld [vmem:[#allocation14] sm:$0xff]  ;;  %v3021_v57 = vld [vmem:[#allocation7 + $0x22c] ss:$16 sps:$4 sm:$0xff]  }
  0xd8   : > { %1047 = vmatprep.subr.bf16.mxu1 %v2956_v1  ;;  %v626_v45 = vpack.c.bf16 %v624_v44, %v624_v44  ;;  %v3018_v56 = vld [vmem:[#allocation7 + $0x224] ss:$16 sps:$4 sm:$0xff]   ;;  %v3019_v59 = vld [vmem:[#allocation7 + $0x228] ss:$16 sps:$4 sm:$0xff]   ;;  %v3027_v61 = vld [vmem:[#allocation7 + $0x24c] ss:$16 sps:$4 sm:$0xff]  }
  0xd9   : > { %2533 = vmatmul.mubr.msk.bf16.vlgmr.msra.gmra.mrb[0].mxu0 %vm2532_vm11, %v3570_v50  ;;  %v3030_v0 = vld [vmem:[#allocation7 + $0x264] ss:$16 sps:$4 sm:$0xff]   ;;  %v3033_v1 = vld [vmem:[#allocation7 + $0x26c] ss:$16 sps:$4 sm:$0xff]  }
  0xda   : > { %1075 = vmatpush1.bf16.msra.mxu0 %v2916_v51  ;;  %1065 = vmatprep.mubr.bf16.mxu1 %v626_v45  ;;  %v3093_v44 = vld [vmem:[#allocation7 + $0x3ac] ss:$16 sps:$4 sm:$0xff]  }
  0xdb   : > { %1076 = vmatprep.subr.bf16.mxu0 %v2924_v54  ;;  %1048 = vmatpush1.bf16.msra.mxu1 %v2961_v3  ;;  %v3013_v54 = vld [vmem:[#allocation7 + $0x208] ss:$16 sps:$4 sm:$0xff]  }
  0xdc   : > { %1049 = vmatprep.subr.bf16.mxu1 %v2962_v5  ;;  %1106 = vmatprep.mubr.bf16.mxu0 %v626_v45  ;;  %v3031_v3 = vld [vmem:[#allocation7 + $0x268] ss:$16 sps:$4 sm:$0xff]   ;;  %v3039_v5 = vld [vmem:[#allocation7 + $0x28c] ss:$16 sps:$4 sm:$0xff]   ;;  %v3096_v45 = vld [vmem:[#allocation7 + $0x3c4] ss:$16 sps:$4 sm:$0xff]  }
  0xde   : > { %1077 = vmatpush1.bf16.msra.mxu0 %v2922_v55 }
  0xdf   : > { %1078 = vmatprep.subr.bf16.mxu0 %v2930_v58  ;;  %1050 = vmatpush1.bf16.msra.mxu1 %v2967_v8  ;;  %v3016_v58 = vld [vmem:[#allocation7 + $0x220] ss:$16 sps:$4 sm:$0xff]   ;;  %v3042_v8 = vld [vmem:[#allocation7 + $0x2a4] ss:$16 sps:$4 sm:$0xff]  }
  0xe0   : > { %1051 = vmatprep.subr.bf16.mxu1 %v2968_v9  ;;  %v3045_v9 = vld [vmem:[#allocation7 + $0x2ac] ss:$16 sps:$4 sm:$0xff]  }
  0xe2   : > { %1079 = vmatpush1.bf16.msra.mxu0 %v2928_v60  ;;  %v3024_v60 = vld [vmem:[#allocation7 + $0x244] ss:$16 sps:$4 sm:$0xff]  }
  0xe3   : > { %1080 = vmatprep.subr.bf16.mxu0 %v2936_v62  ;;  %1052 = vmatpush1.bf16.msra.mxu1 %v2973_v11  ;;  %v3022_v62 = vld [vmem:[#allocation7 + $0x240] ss:$16 sps:$4 sm:$0xff]   ;;  %v3043_v11 = vld [vmem:[#allocation7 + $0x2a8] ss:$16 sps:$4 sm:$0xff]  }
  0xe4   : > { %1053 = vmatprep.subr.bf16.mxu1 %v2974_v14  ;;  %v3051_v14 = vld [vmem:[#allocation7 + $0x2cc] ss:$16 sps:$4 sm:$0xff]  }
  0xe6   : > { %1081 = vmatpush1.bf16.msra.mxu0 %v2934_v63  ;;  %v3025_v63 = vld [vmem:[#allocation7 + $0x248] ss:$16 sps:$4 sm:$0xff]  }
  0xe7   : > { %1082 = vmatprep.subr.bf16.mxu0 %v2942_v2  ;;  %1054 = vmatpush1.bf16.msra.mxu1 %v2979_v17  ;;  %v3028_v2 = vld [vmem:[#allocation7 + $0x260] ss:$16 sps:$4 sm:$0xff]   ;;  %v3054_v17 = vld [vmem:[#allocation7 + $0x2e4] ss:$16 sps:$4 sm:$0xff]  }
  0xe8   : > { %1055 = vmatprep.subr.bf16.mxu1 %v2980_v19  ;;  %v3052_v19 = vld [vmem:[#allocation7 + $0x2e0] ss:$16 sps:$4 sm:$0xff]  }
  0xea   : > { %1083 = vmatpush1.bf16.msra.mxu0 %v2940_v4  ;;  %v3036_v4 = vld [vmem:[#allocation7 + $0x284] ss:$16 sps:$4 sm:$0xff]  }
  0xeb   : > { %1084 = vmatprep.subr.bf16.mxu0 %v2948_v6  ;;  %1056 = vmatpush1.bf16.msra.mxu1 %v2985_v20  ;;  %v3034_v6 = vld [vmem:[#allocation7 + $0x280] ss:$16 sps:$4 sm:$0xff]   ;;  %v3055_v20 = vld [vmem:[#allocation7 + $0x2e8] ss:$16 sps:$4 sm:$0xff]  }
  0xec   : > { %1057 = vmatprep.subr.bf16.mxu1 %v2986_v22  ;;  %v3063_v22 = vld [vmem:[#allocation7 + $0x30c] ss:$16 sps:$4 sm:$0xff]  }
  0xee   : > { %1085 = vmatpush1.bf16.msra.mxu0 %v2946_v7  ;;  %v3037_v7 = vld [vmem:[#allocation7 + $0x288] ss:$16 sps:$4 sm:$0xff]  }
  0xef   : > { %1086 = vmatprep.subr.bf16.mxu0 %v2954_v10  ;;  %1058 = vmatpush1.bf16.msra.mxu1 %v2991_v24  ;;  %v3040_v10 = vld [vmem:[#allocation7 + $0x2a0] ss:$16 sps:$4 sm:$0xff]   ;;  %v3061_v24 = vld [vmem:[#allocation7 + $0x308] ss:$16 sps:$4 sm:$0xff]  }
  0xf0   : > { %1059 = vmatprep.subr.bf16.mxu1 %v2992_v26  ;;  %v3069_v26 = vld [vmem:[#allocation7 + $0x32c] ss:$16 sps:$4 sm:$0xff]  }
  0xf2   : > { %1087 = vmatpush1.bf16.msra.mxu0 %v2952_v13  ;;  %v3048_v13 = vld [vmem:[#allocation7 + $0x2c4] ss:$16 sps:$4 sm:$0xff]  }
  0xf3   : > { %1088 = vmatprep.subr.bf16.mxu0 %v2960_v15  ;;  %1060 = vmatpush1.bf16.msra.mxu1 %v2997_v28  ;;  %v3046_v15 = vld [vmem:[#allocation7 + $0x2c0] ss:$16 sps:$4 sm:$0xff]   ;;  %v3067_v28 = vld [vmem:[#allocation7 + $0x328] ss:$16 sps:$4 sm:$0xff]  }
  0xf4   : > { %1061 = vmatprep.subr.bf16.mxu1 %v2998_v30  ;;  %v3075_v30 = vld [vmem:[#allocation7 + $0x34c] ss:$16 sps:$4 sm:$0xff]  }
  0xf6   : > { %1089 = vmatpush1.bf16.msra.mxu0 %v2958_v16  ;;  %v3049_v16 = vld [vmem:[#allocation7 + $0x2c8] ss:$16 sps:$4 sm:$0xff]  }
  0xf7   : > { %1090 = vmatprep.subr.bf16.mxu0 %v2966_v18  ;;  %1062 = vmatpush1.bf16.msra.mxu1 %v3003_v32  ;;  %v3057_v18 = vld [vmem:[#allocation7 + $0x2ec] ss:$16 sps:$4 sm:$0xff]   ;;  %v3073_v32 = vld [vmem:[#allocation7 + $0x348] ss:$16 sps:$4 sm:$0xff]  }
  0xf8   : > { %1063 = vmatprep.subr.bf16.mxu1 %v3004_v40  ;;  %v3085_v40 = vld [vmem:[#allocation7 + $0x388] ss:$16 sps:$4 sm:$0xff]  }
  0xfa   : > { %1091 = vmatpush1.bf16.msra.mxu0 %v2964_v21  ;;  %v3060_v21 = vld [vmem:[#allocation7 + $0x304] ss:$16 sps:$4 sm:$0xff]  }
  0xfb   : > { %1092 = vmatprep.subr.bf16.mxu0 %v2972_v23  ;;  %1064 = vmatpush1.bf16.msra.mxu1 %v3009_v43  ;;  %v3058_v23 = vld [vmem:[#allocation7 + $0x300] ss:$16 sps:$4 sm:$0xff]   ;;  %v3091_v43 = vld [vmem:[#allocation7 + $0x3a8] ss:$16 sps:$4 sm:$0xff]  }
  0xfc   : > { %1555 = vmatprep.subr.bf16.mxu1 %v3012_v46  ;;  %v3099_v46 = vld [vmem:[#allocation7 + $0x3cc] ss:$16 sps:$4 sm:$0xff]  }
  0xfe   : > { %1093 = vmatpush1.bf16.msra.mxu0 %v2970_v25  ;;  %v3066_v25 = vld [vmem:[#allocation7 + $0x324] ss:$16 sps:$4 sm:$0xff]  }
  0xff   : > { %1094 = vmatprep.subr.bf16.mxu0 %v2978_v27  ;;  %v3064_v27 = vld [vmem:[#allocation7 + $0x320] ss:$16 sps:$4 sm:$0xff]  }
 0x102   : > { %1095 = vmatpush1.bf16.msra.mxu0 %v2976_v29  ;;  %v3072_v29 = vld [vmem:[#allocation7 + $0x344] ss:$16 sps:$4 sm:$0xff]  }
 0x103   : > { %1096 = vmatprep.subr.bf16.mxu0 %v2984_v31  ;;  %v3070_v31 = vld [vmem:[#allocation7 + $0x340] ss:$16 sps:$4 sm:$0xff]  }
 0x106   : > { %1097 = vmatpush1.bf16.msra.mxu0 %v2982_v33  ;;  %v3078_v33 = vld [vmem:[#allocation7 + $0x364] ss:$16 sps:$4 sm:$0xff]  }
 0x107   : > { %1098 = vmatprep.subr.bf16.mxu0 %v2990_v34  ;;  %v3081_v34 = vld [vmem:[#allocation7 + $0x36c] ss:$16 sps:$4 sm:$0xff]  }
 0x10a   : > { %1099 = vmatpush1.bf16.msra.mxu0 %v2988_v35  ;;  %v3076_v35 = vld [vmem:[#allocation7 + $0x360] ss:$16 sps:$4 sm:$0xff]  }
 0x10b   : > { %1100 = vmatprep.subr.bf16.mxu0 %v2996_v36  ;;  %v3079_v36 = vld [vmem:[#allocation7 + $0x368] ss:$16 sps:$4 sm:$0xff]  }
 0x10e   : > { %1101 = vmatpush1.bf16.msra.mxu0 %v2994_v37  ;;  %v3084_v37 = vld [vmem:[#allocation7 + $0x384] ss:$16 sps:$4 sm:$0xff]  }
 0x10f   : > { %1102 = vmatprep.subr.bf16.mxu0 %v3002_v38  ;;  %v3087_v38 = vld [vmem:[#allocation7 + $0x38c] ss:$16 sps:$4 sm:$0xff]  }
 0x112   : > { %1103 = vmatpush1.bf16.msra.mxu0 %v3000_v39  ;;  %v3082_v39 = vld [vmem:[#allocation7 + $0x380] ss:$16 sps:$4 sm:$0xff]  }
 0x113   : > { %1104 = vmatprep.subr.bf16.mxu0 %v3008_v41  ;;  %v3090_v41 = vld [vmem:[#allocation7 + $0x3a4] ss:$16 sps:$4 sm:$0xff]  }
 0x116   : > { %1105 = vmatpush1.bf16.msra.mxu0 %v3006_v42  ;;  %v3088_v42 = vld [vmem:[#allocation7 + $0x3a0] ss:$16 sps:$4 sm:$0xff]  }
 0x117   : > { %1596 = vmatprep.subr.bf16.mxu0 %v3015_v47  ;;  %v1143_v47 = vld [vmem:[#allocation14 + $0x8] sm:$0xff] }
 0x1ac   : > { %v2777_v48 = vpop.f32.mrb[0].mxu0 }
 0x1ad   : > { %v2778_v49 = vpop.f32.mrb[1].mxu0 }
 0x1ae   : > { %v2779_v50 = vadd.f32 %v2778_v49, %v2777_v48  ;;  %v2780_v51 = vpop.f32.mrb[2].mxu0  ;;  %v3094_v48 = vld [vmem:[#allocation7 + $0x3c0] ss:$16 sps:$4 sm:$0xff]   ;;  %v3097_v49 = vld [vmem:[#allocation7 + $0x3c8] ss:$16 sps:$4 sm:$0xff]  }
 0x1af   : > { %v2781_v52 = vpop.f32.mrb[3].mxu0  ;;  %v3102_v51 = vld [vmem:[#allocation7 + $0x3e4] ss:$16 sps:$4 sm:$0xff]  }
 0x1b0   : > { %v623_v55 = vpack.c.bf16 %v2779_v50, %v2779_v50  ;;  %v1146_v50 = vpack.c.bf16 %v1143_v47, %v1143_v47  ;;  %v3105_v52 = vld [vmem:[#allocation7 + $0x3ec] ss:$16 sps:$4 sm:$0xff]   ;;  %v3127_v47 = vld [vmem:[#allocation7 + $0x468] ss:$16 sps:$4 sm:$0xff]  }
 0x1b2   : > { %1066 = vmatmul.mubr.bf16.vlgmr.msra.gmra.mrb[0].mxu1 %v623_v55  ;;  %1107 = vmatmul.mubr.bf16.vlgmr.msra.gmra.mrb[4].mxu0 %v623_v55  ;;  %v3108_v55 = vld [vmem:[#allocation7 + $0x404] ss:$16 sps:$4 sm:$0xff]  }
 0x1b3   : > { %1556 = vmatpush1.bf16.msra.mxu1 %v3010_v53  ;;  %1597 = vmatpush1.bf16.msra.mxu0 %v3013_v54  ;;  %v3100_v53 = vld [vmem:[#allocation7 + $0x3e0] ss:$16 sps:$4 sm:$0xff]   ;;  %v3103_v54 = vld [vmem:[#allocation7 + $0x3e8] ss:$16 sps:$4 sm:$0xff]  }
 0x1b4   : > { %1557 = vmatprep.subr.bf16.mxu1 %v3018_v56  ;;  %1598 = vmatprep.subr.bf16.mxu0 %v3021_v57  ;;  %v3111_v56 = vld [vmem:[#allocation7 + $0x40c] ss:$16 sps:$4 sm:$0xff]   ;;  %v3880_v57 = vsub.s32 0, %v3851_v12 }
 0x1b5   : > { %1587 = vmatprep.mubr.bf16.mxu1 %v1146_v50  ;;  %1628 = vmatprep.mubr.bf16.mxu0 %v1146_v50  ;;  %v3130_v50 = vld [vmem:[#allocation7 + $0x480] ss:$16 sps:$4 sm:$0xff]  }
 0x1b7   : > { %1558 = vmatpush1.bf16.msra.mxu1 %v3016_v58  ;;  %1599 = vmatpush1.bf16.msra.mxu0 %v3019_v59  ;;  %v691_v58 = vld [vmem:[#allocation9] sm:$0xf]  ;;  %v3883_v59 = vsub.s32 1, %v3851_v12 }
 0x1b8   : > { %1559 = vmatprep.subr.bf16.mxu1 %v3024_v60  ;;  %1600 = vmatprep.subr.bf16.mxu0 %v3027_v61  ;;  %v696_v60 = vrot.slane %v691_v58, %v3880_v57 }
 0x1b9   : > { %v700_v61 = vrot.slane %v691_v58, %v3883_v59 }
 0x1bb   : > { %1560 = vmatpush1.bf16.msra.mxu1 %v3022_v62  ;;  %1601 = vmatpush1.bf16.msra.mxu0 %v3025_v63 }
 0x1bc   : > { %1561 = vmatprep.subr.bf16.mxu1 %v3030_v0  ;;  %1602 = vmatprep.subr.bf16.mxu0 %v3033_v1  ;;  %v3888_v0 = vsub.s32 3, %v3851_v12 }
 0x1bf   : > { %1562 = vmatpush1.bf16.msra.mxu1 %v3028_v2  ;;  %1603 = vmatpush1.bf16.msra.mxu0 %v3031_v3 }
 0x1c0   : > { %1563 = vmatprep.subr.bf16.mxu1 %v3036_v4  ;;  %1604 = vmatprep.subr.bf16.mxu0 %v3039_v5 }
 0x1c3   : > { %1564 = vmatpush1.bf16.msra.mxu1 %v3034_v6  ;;  %1605 = vmatpush1.bf16.msra.mxu0 %v3037_v7 }
 0x1c4   : > { %1565 = vmatprep.subr.bf16.mxu1 %v3042_v8  ;;  %1606 = vmatprep.subr.bf16.mxu0 %v3045_v9 }
 0x1c7   : > { %1566 = vmatpush1.bf16.msra.mxu1 %v3040_v10  ;;  %1607 = vmatpush1.bf16.msra.mxu0 %v3043_v11  ;;  %v708_v11 = vrot.slane %v691_v58, %v3888_v0 }
 0x1c8   : > { %1567 = vmatprep.subr.bf16.mxu1 %v3048_v13  ;;  %1608 = vmatprep.subr.bf16.mxu0 %v3051_v14  ;;  %v3892_v13 = vsub.s32 2, %v3851_v12 }
 0x1cb   : > { %1568 = vmatpush1.bf16.msra.mxu1 %v3046_v15  ;;  %1609 = vmatpush1.bf16.msra.mxu0 %v3049_v16  ;;  %v704_v15 = vrot.slane %v691_v58, %v3892_v13  ;;  %v3147_v58 = vld [vmem:[#allocation7 + $0x4cc] ss:$16 sps:$4 sm:$0xff]  }
 0x1cc   : > { %1569 = vmatprep.subr.bf16.mxu1 %v3054_v17  ;;  %1610 = vmatprep.subr.bf16.mxu0 %v3057_v18 }
 0x1cf   : > { %1570 = vmatpush1.bf16.msra.mxu1 %v3052_v19  ;;  %1611 = vmatpush1.bf16.msra.mxu0 %v3055_v20 }
 0x1d0   : > { %1571 = vmatprep.subr.bf16.mxu1 %v3060_v21  ;;  %1612 = vmatprep.subr.bf16.mxu0 %v3063_v22 }
 0x1d3   : > { %1572 = vmatpush1.bf16.msra.mxu1 %v3058_v23  ;;  %1613 = vmatpush1.bf16.msra.mxu0 %v3061_v24  ;;  %v625_v24 = vld [vmem:[#allocation16] sm:$0xff] }
 0x1d4   : > { %1573 = vmatprep.subr.bf16.mxu1 %v3066_v25  ;;  %1614 = vmatprep.subr.bf16.mxu0 %v3069_v26 }
 0x1d7   : > { %1574 = vmatpush1.bf16.msra.mxu1 %v3064_v27  ;;  %1615 = vmatpush1.bf16.msra.mxu0 %v3067_v28 }
 0x1d8   : > { %1575 = vmatprep.subr.bf16.mxu1 %v3072_v29  ;;  %1616 = vmatprep.subr.bf16.mxu0 %v3075_v30 }
 0x1db   : > { %1576 = vmatpush1.bf16.msra.mxu1 %v3070_v31  ;;  %1617 = vmatpush1.bf16.msra.mxu0 %v3073_v32 }
 0x1dc   : > { %1577 = vmatprep.subr.bf16.mxu1 %v3078_v33  ;;  %1618 = vmatprep.subr.bf16.mxu0 %v3081_v34  ;;  %v3106_v33 = vld [vmem:[#allocation7 + $0x400] ss:$16 sps:$4 sm:$0xff]   ;;  %v3109_v34 = vld [vmem:[#allocation7 + $0x408] ss:$16 sps:$4 sm:$0xff]  }
 0x1df   : > { %1578 = vmatpush1.bf16.msra.mxu1 %v3076_v35  ;;  %1619 = vmatpush1.bf16.msra.mxu0 %v3079_v36  ;;  %v3114_v36 = vld [vmem:[#allocation7 + $0x424] ss:$16 sps:$4 sm:$0xff]  }
 0x1e0   : > { %1579 = vmatprep.subr.bf16.mxu1 %v3084_v37  ;;  %1620 = vmatprep.subr.bf16.mxu0 %v3087_v38  ;;  %v3117_v37 = vld [vmem:[#allocation7 + $0x42c] ss:$16 sps:$4 sm:$0xff]   ;;  %v3112_v38 = vld [vmem:[#allocation7 + $0x420] ss:$16 sps:$4 sm:$0xff]  }
 0x1e3   : > { %1580 = vmatpush1.bf16.msra.mxu1 %v3082_v39  ;;  %1621 = vmatpush1.bf16.msra.mxu0 %v3085_v40  ;;  %v3115_v39 = vld [vmem:[#allocation7 + $0x428] ss:$16 sps:$4 sm:$0xff]   ;;  %v3120_v40 = vld [vmem:[#allocation7 + $0x444] ss:$16 sps:$4 sm:$0xff]  }
 0x1e4   : > { %1581 = vmatprep.subr.bf16.mxu1 %v3090_v41  ;;  %1622 = vmatprep.subr.bf16.mxu0 %v3093_v44  ;;  %v3123_v41 = vld [vmem:[#allocation7 + $0x44c] ss:$16 sps:$4 sm:$0xff]   ;;  %v3126_v44 = vld [vmem:[#allocation7 + $0x464] ss:$16 sps:$4 sm:$0xff]  }
 0x1e7   : > { %1582 = vmatpush1.bf16.msra.mxu1 %v3088_v42  ;;  %1623 = vmatpush1.bf16.msra.mxu0 %v3091_v43  ;;  %v3118_v42 = vld [vmem:[#allocation7 + $0x440] ss:$16 sps:$4 sm:$0xff]   ;;  %v3121_v43 = vld [vmem:[#allocation7 + $0x448] ss:$16 sps:$4 sm:$0xff]  }
 0x1e8   : > { %1583 = vmatprep.subr.bf16.mxu1 %v3096_v45  ;;  %1624 = vmatprep.subr.bf16.mxu0 %v3099_v46  ;;  %v3129_v45 = vld [vmem:[#allocation7 + $0x46c] ss:$16 sps:$4 sm:$0xff]   ;;  %v3124_v46 = vld [vmem:[#allocation7 + $0x460] ss:$16 sps:$4 sm:$0xff]  }
 0x1eb   : > { %1584 = vmatpush1.bf16.msra.mxu1 %v3094_v48  ;;  %1625 = vmatpush1.bf16.msra.mxu0 %v3097_v49  ;;  %v3132_v48 = vld [vmem:[#allocation7 + $0x484] ss:$16 sps:$4 sm:$0xff]   ;;  %v3135_v49 = vld [vmem:[#allocation7 + $0x48c] ss:$16 sps:$4 sm:$0xff]  }
 0x1ec   : > { %1585 = vmatprep.subr.bf16.mxu1 %v3102_v51  ;;  %1626 = vmatprep.subr.bf16.mxu0 %v3105_v52  ;;  %v3133_v51 = vld [vmem:[#allocation7 + $0x488] ss:$16 sps:$4 sm:$0xff]   ;;  %v3138_v52 = vld [vmem:[#allocation7 + $0x4a4] ss:$16 sps:$4 sm:$0xff]  }
 0x1ef   : > { %1586 = vmatpush1.bf16.msra.mxu1 %v3100_v53  ;;  %1627 = vmatpush1.bf16.msra.mxu0 %v3103_v54  ;;  %v3141_v53 = vld [vmem:[#allocation7 + $0x4ac] ss:$16 sps:$4 sm:$0xff]   ;;  %v3136_v54 = vld [vmem:[#allocation7 + $0x4a0] ss:$16 sps:$4 sm:$0xff]  }
 0x1f0   : > { %2077 = vmatprep.subr.bf16.mxu1 %v3108_v55  ;;  %2118 = vmatprep.subr.bf16.mxu0 %v3111_v56  ;;  %v3139_v55 = vld [vmem:[#allocation7 + $0x4a8] ss:$16 sps:$4 sm:$0xff]   ;;  %v3144_v56 = vld [vmem:[#allocation7 + $0x4c4] ss:$16 sps:$4 sm:$0xff]  }
 0x285   : > { %v1067_v62 = vpop.f32.mrb[0].mxu1  ;;  %v1108_v63 = vpop.f32.mrb[4].mxu0 }
 0x286   : > { %v1068_v1 = vadd.f32 %v1067_v62, %v696_v60  ;;  %v1069_v2 = vpop.f32.mrb[1].mxu1  ;;  %v1110_v3 = vpop.f32.mrb[5].mxu0  ;;  %v1109_v17 = vadd.f32 %v1108_v63, %v704_v15  ;;  %v3142_v60 = vld [vmem:[#allocation7 + $0x4c0] ss:$16 sps:$4 sm:$0xff]   ;;  %v3150_v62 = vld [vmem:[#allocation7 + $0x4e4] ss:$16 sps:$4 sm:$0xff]  }
 0x287   : > { %v1070_v4 = vadd.f32 %v1069_v2, %v700_v61  ;;  %v1071_v5 = vpop.f32.mrb[2].mxu1  ;;  %v1112_v6 = vpop.f32.mrb[6].mxu0  ;;  %v1111_v14 = vadd.f32 %v1110_v3, %v708_v11  ;;  %v3145_v61 = vld [vmem:[#allocation7 + $0x4c8] ss:$16 sps:$4 sm:$0xff]   ;;  %v3153_v63 = vld [vmem:[#allocation7 + $0x4ec] ss:$16 sps:$4 sm:$0xff]  }
 0x288   : > { %v2598_v7 = vmul.f32 -1.442695, %v1068_v1  ;;  %v1072_v8 = vpop.f32.mrb[3].mxu1  ;;  %v1113_v9 = vpop.f32.mrb[7].mxu0  ;;  %v3148_v1 = vld [vmem:[#allocation7 + $0x4e0] ss:$16 sps:$4 sm:$0xff]  }
 0x289   : > { %v2599_v10 = vmul.f32 -1.442695, %v1070_v4  ;;  %v2600_v16 = vmul.f32 -1.442695, %v1111_v14  ;;  %v3151_v2 = vld [vmem:[#allocation7 + $0x4e8] ss:$16 sps:$4 sm:$0xff]  }
 0x28a   : > { %3226 = vpow2.f32 %v2598_v7  ;;  %v3156_v3 = vld [vmem:[#allocation7 + $0x504] ss:$16 sps:$4 sm:$0xff]   ;;  %v3159_v4 = vld [vmem:[#allocation7 + $0x50c] ss:$16 sps:$4 sm:$0xff]   ;;  %v3154_v5 = vld [vmem:[#allocation7 + $0x500] ss:$16 sps:$4 sm:$0xff]  }
 0x28b   : > { %3228 = vpow2.f32 %v2599_v10  ;;  %v3157_v6 = vld [vmem:[#allocation7 + $0x508] ss:$16 sps:$4 sm:$0xff]   ;;  %v3162_v7 = vld [vmem:[#allocation7 + $0x524] ss:$16 sps:$4 sm:$0xff]   ;;  %v3165_v8 = vld [vmem:[#allocation7 + $0x52c] ss:$16 sps:$4 sm:$0xff]  }
 0x28c   : > { %3230 = vpow2.f32 %v2600_v16  ;;  %v3160_v9 = vld [vmem:[#allocation7 + $0x520] ss:$16 sps:$4 sm:$0xff]   ;;  %v3163_v10 = vld [vmem:[#allocation7 + $0x528] ss:$16 sps:$4 sm:$0xff]   ;;  %v3168_v11 = vld [vmem:[#allocation7 + $0x544] ss:$16 sps:$4 sm:$0xff]  }
 0x28d   : > { %3232 = vtanh.f32 %v1109_v17  ;;  %v3171_v14 = vld [vmem:[#allocation7 + $0x54c] ss:$16 sps:$4 sm:$0xff]   ;;  %v3166_v15 = vld [vmem:[#allocation7 + $0x540] ss:$16 sps:$4 sm:$0xff]   ;;  %v3169_v16 = vld [vmem:[#allocation7 + $0x548] ss:$16 sps:$4 sm:$0xff]  }
 0x28e   : > { %v3174_v17 = vld [vmem:[#allocation7 + $0x564] ss:$16 sps:$4 sm:$0xff]  }
 0x294   : > { %v3227_v18 = vpop.eup %3226 }
 0x295   : > { %v3229_v19 = vpop.eup %3228  ;;  %v1118_v20 = vadd.f32 1.0, %v3227_v18  ;;  %v3177_v18 = vld [vmem:[#allocation7 + $0x56c] ss:$16 sps:$4 sm:$0xff]  }
 0x296   : > { %v1124_v21 = vadd.f32 1.0, %v3229_v19  ;;  %v3231_v22 = vpop.eup %3230  ;;  %v3172_v19 = vld [vmem:[#allocation7 + $0x560] ss:$16 sps:$4 sm:$0xff]  }
 0x297   : > { %3234 = vrcp.f32 %v1118_v20  ;;  %v3233_v23 = vpop.eup %3232  ;;  %v1131_v27 = vadd.f32 1.0, %v3231_v22  ;;  %v3175_v20 = vld [vmem:[#allocation7 + $0x568] ss:$16 sps:$4 sm:$0xff]   ;;  %v3183_v22 = vld [vmem:[#allocation7 + $0x58c] ss:$16 sps:$4 sm:$0xff]  }
 0x298   : > { %3236 = vrcp.f32 %v1124_v21  ;;  %v3180_v21 = vld [vmem:[#allocation7 + $0x584] ss:$16 sps:$4 sm:$0xff]  }
 0x299   : > { %3238 = vrcp.f32 %v1131_v27  ;;  %v3189_v27 = vld [vmem:[#allocation7 + $0x5ac] ss:$16 sps:$4 sm:$0xff]  }
 0x2a1   : > { %v3235_v25 = vpop.eup %3234 }
 0x2a2   : > { %v3237_v12 = vpop.eup %3236  ;;  %v1135_v26 = vmul.f32 %v3235_v25, %v3233_v23  ;;  %v3178_v23 = vld [vmem:[#allocation7 + $0x580] ss:$16 sps:$4 sm:$0xff]   ;;  %v3186_v25 = vld [vmem:[#allocation7 + $0x5a4] ss:$16 sps:$4 sm:$0xff]  }
 0x2a3   : > { %v1134_v28 = vmul.f32 %v3237_v12, %v625_v24  ;;  %v3239_v30 = vpop.eup %3238  ;;  %v3181_v24 = vld [vmem:[#allocation7 + $0x588] ss:$16 sps:$4 sm:$0xff]   ;;  %v3184_v12 = vld [vmem:[#allocation7 + $0x5a0] ss:$16 sps:$4 sm:$0xff]  }
 0x2a5   : > { %v1136_v29 = vadd.f32 %v1135_v26, %v1134_v28  ;;  %v3187_v26 = vld [vmem:[#allocation7 + $0x5a8] ss:$16 sps:$4 sm:$0xff]   ;;  %v3192_v28 = vld [vmem:[#allocation7 + $0x5c4] ss:$16 sps:$4 sm:$0xff]  }
 0x2a7   : > { %3240 = vtanh.f32 %v1136_v29  ;;  %1140 = vst [vmem:[#allocation16] sm:$0xff] %v1136_v29  ;;  %v3195_v29 = vld [vmem:[#allocation7 + $0x5cc] ss:$16 sps:$4 sm:$0xff]  }
 0x2b1   : > { %v3241_v31 = vpop.eup %3240 }
 0x2b2   : > { %v1138_v32 = vmul.f32 %v3241_v31, %v3239_v30  ;;  %v1665_v30 = vld [vmem:[#allocation14 + $0x10] sm:$0xff]  ;;  %v3190_v31 = vld [vmem:[#allocation7 + $0x5c0] ss:$16 sps:$4 sm:$0xff]  }
 0x2b4   : > { %v1141_v35 = vpack.c.bf16 %v1138_v32, %v1138_v32  ;;  %1139 = vst [vmem:[#allocation14] sm:$0xff] %v1138_v32  ;;  %v3193_v32 = vld [vmem:[#allocation7 + $0x5c8] ss:$16 sps:$4 sm:$0xff]  }
 0x2b6   : > { %1588 = vmatmul.mubr.bf16.vlgmr.msra.gmra.mrb[4].mxu1 %v1141_v35  ;;  %1629 = vmatmul.mubr.bf16.vlgmr.msra.gmra.mrb[8].mxu0 %v1141_v35  ;;  %v3201_v35 = vld [vmem:[#allocation7 + $0x5ec] ss:$16 sps:$4 sm:$0xff]  }
 0x2b7   : > { %2078 = vmatpush1.bf16.msra.mxu1 %v3106_v33  ;;  %2119 = vmatpush1.bf16.msra.mxu0 %v3109_v34  ;;  %v1668_v33 = vpack.c.bf16 %v1665_v30, %v1665_v30  ;;  %v3198_v34 = vld [vmem:[#allocation7 + $0x5e4] ss:$16 sps:$4 sm:$0xff]   ;;  %v3225_v30 = vld [vmem:[#allocation10 + $0x74] ss:$8 sps:$4 sm:$0xff]  }
 0x2b8   : > { %2079 = vmatprep.subr.bf16.mxu1 %v3114_v36  ;;  %2120 = vmatprep.subr.bf16.mxu0 %v3117_v37  ;;  %v3196_v36 = vld [vmem:[#allocation7 + $0x5e0] ss:$16 sps:$4 sm:$0xff]   ;;  %v3199_v37 = vld [vmem:[#allocation7 + $0x5e8] ss:$16 sps:$4 sm:$0xff]  }
 0x2b9   : > { %2109 = vmatprep.mubr.bf16.mxu1 %v1668_v33  ;;  %2150 = vmatprep.mubr.bf16.mxu0 %v1668_v33 }
 0x2bb   : > { %2080 = vmatpush1.bf16.msra.mxu1 %v3112_v38  ;;  %2121 = vmatpush1.bf16.msra.mxu0 %v3115_v39  ;;  %v1213_v38 = vld [vmem:[#allocation9 + $0x4] sm:$0xf] }
 0x2bc   : > { %2081 = vmatprep.subr.bf16.mxu1 %v3120_v40  ;;  %2122 = vmatprep.subr.bf16.mxu0 %v3123_v41  ;;  %v1218_v39 = vrot.slane %v1213_v38, %v3880_v57  ;;  %v1222_v40 = vrot.slane %v1213_v38, %v3883_v59 }
 0x2bf   : > { %2082 = vmatpush1.bf16.msra.mxu1 %v3118_v42  ;;  %2123 = vmatpush1.bf16.msra.mxu0 %v3121_v43 }
 0x2c0   : > { %2083 = vmatprep.subr.bf16.mxu1 %v3126_v44  ;;  %2124 = vmatprep.subr.bf16.mxu0 %v3129_v45 }
 0x2c3   : > { %2084 = vmatpush1.bf16.msra.mxu1 %v3124_v46  ;;  %2125 = vmatpush1.bf16.msra.mxu0 %v3127_v47 }
 0x2c4   : > { %2085 = vmatprep.subr.bf16.mxu1 %v3132_v48  ;;  %2126 = vmatprep.subr.bf16.mxu0 %v3135_v49 }
 0x2c7   : > { %2086 = vmatpush1.bf16.msra.mxu1 %v3130_v50  ;;  %2127 = vmatpush1.bf16.msra.mxu0 %v3133_v51 }
 0x2c8   : > { %2087 = vmatprep.subr.bf16.mxu1 %v3138_v52  ;;  %2128 = vmatprep.subr.bf16.mxu0 %v3141_v53  ;;  %v1230_v53 = vrot.slane %v1213_v38, %v3888_v0 }
 0x2cb   : > { %2088 = vmatpush1.bf16.msra.mxu1 %v3136_v54  ;;  %2129 = vmatpush1.bf16.msra.mxu0 %v3139_v55  ;;  %v1226_v55 = vrot.slane %v1213_v38, %v3892_v13 }
 0x2cc   : > { %2089 = vmatprep.subr.bf16.mxu1 %v3144_v56  ;;  %2130 = vmatprep.subr.bf16.mxu0 %v3147_v58 }
 0x2cf   : > { %2090 = vmatpush1.bf16.msra.mxu1 %v3142_v60  ;;  %2131 = vmatpush1.bf16.msra.mxu0 %v3145_v61 }
 0x2d0   : > { %2091 = vmatprep.subr.bf16.mxu1 %v3150_v62  ;;  %2132 = vmatprep.subr.bf16.mxu0 %v3153_v63 }
 0x2d3   : > { %2092 = vmatpush1.bf16.msra.mxu1 %v3148_v1  ;;  %2133 = vmatpush1.bf16.msra.mxu0 %v3151_v2 }
 0x2d4   : > { %2093 = vmatprep.subr.bf16.mxu1 %v3156_v3  ;;  %2134 = vmatprep.subr.bf16.mxu0 %v3159_v4  ;;  %v1145_v3 = vld [vmem:[#allocation16 + $0x8] sm:$0xff] }
 0x2d7   : > { %2094 = vmatpush1.bf16.msra.mxu1 %v3154_v5  ;;  %2135 = vmatpush1.bf16.msra.mxu0 %v3157_v6 }
 0x2d8   : > { %2095 = vmatprep.subr.bf16.mxu1 %v3162_v7  ;;  %2136 = vmatprep.subr.bf16.mxu0 %v3165_v8 }
 0x2db   : > { %2096 = vmatpush1.bf16.msra.mxu1 %v3160_v9  ;;  %2137 = vmatpush1.bf16.msra.mxu0 %v3163_v10 }
 0x2dc   : > { %2097 = vmatprep.subr.bf16.mxu1 %v3168_v11  ;;  %2138 = vmatprep.subr.bf16.mxu0 %v3171_v14 }
 0x2df   : > { %2098 = vmatpush1.bf16.msra.mxu1 %v3166_v15  ;;  %2139 = vmatpush1.bf16.msra.mxu0 %v3169_v16  ;;  %v3204_v16 = vld [vmem:[#allocation10 + $0x4] ss:$8 sps:$4 sm:$0xff]  }
 0x2e0   : > { %2099 = vmatprep.subr.bf16.mxu1 %v3174_v17  ;;  %2140 = vmatprep.subr.bf16.mxu0 %v3177_v18  ;;  %v3202_v17 = vld [vmem:[#allocation10] ss:$8 sps:$4 sm:$0xff]   ;;  %v3207_v18 = vld [vmem:[#allocation10 + $0x14] ss:$8 sps:$4 sm:$0xff]  }
 0x2e3   : > { %2100 = vmatpush1.bf16.msra.mxu1 %v3172_v19  ;;  %2141 = vmatpush1.bf16.msra.mxu0 %v3175_v20  ;;  %v3205_v19 = vld [vmem:[#allocation10 + $0x10] ss:$8 sps:$4 sm:$0xff]   ;;  %v3210_v20 = vld [vmem:[#allocation10 + $0x24] ss:$8 sps:$4 sm:$0xff]  }
 0x2e4   : > { %2101 = vmatprep.subr.bf16.mxu1 %v3180_v21  ;;  %2142 = vmatprep.subr.bf16.mxu0 %v3183_v22  ;;  %v3208_v21 = vld [vmem:[#allocation10 + $0x20] ss:$8 sps:$4 sm:$0xff]   ;;  %v3213_v22 = vld [vmem:[#allocation10 + $0x34] ss:$8 sps:$4 sm:$0xff]  }
 0x2e7   : > { %2102 = vmatpush1.bf16.msra.mxu1 %v3178_v23  ;;  %2143 = vmatpush1.bf16.msra.mxu0 %v3181_v24  ;;  %v3211_v23 = vld [vmem:[#allocation10 + $0x30] ss:$8 sps:$4 sm:$0xff]   ;;  %v3216_v24 = vld [vmem:[#allocation10 + $0x44] ss:$8 sps:$4 sm:$0xff]  }
 0x2e8   : > { %2103 = vmatprep.subr.bf16.mxu1 %v3186_v25  ;;  %2144 = vmatprep.subr.bf16.mxu0 %v3189_v27  ;;  %v3214_v25 = vld [vmem:[#allocation10 + $0x40] ss:$8 sps:$4 sm:$0xff]   ;;  %v3222_v27 = vld [vmem:[#allocation10 + $0x64] ss:$8 sps:$4 sm:$0xff]  }
 0x2eb   : > { %2104 = vmatpush1.bf16.msra.mxu1 %v3184_v12  ;;  %2145 = vmatpush1.bf16.msra.mxu0 %v3187_v26  ;;  %v3219_v12 = vld [vmem:[#allocation10 + $0x54] ss:$8 sps:$4 sm:$0xff]   ;;  %v3217_v26 = vld [vmem:[#allocation10 + $0x50] ss:$8 sps:$4 sm:$0xff]  }
 0x2ec   : > { %2105 = vmatprep.subr.bf16.mxu1 %v3192_v28  ;;  %2146 = vmatprep.subr.bf16.mxu0 %v3195_v29  ;;  %v3571_v28 = vmov 0   ;;  %v3220_v29 = vld [vmem:[#allocation10 + $0x60] ss:$8 sps:$4 sm:$0xff]  }
 0x2ef   : > { %2106 = vmatpush1.bf16.msra.mxu1 %v3190_v31  ;;  %2147 = vmatpush1.bf16.msra.mxu0 %v3193_v32  ;;  %v3223_v31 = vld [vmem:[#allocation10 + $0x70] ss:$8 sps:$4 sm:$0xff]   ;;  %v1735_v32 = vld [vmem:[#allocation9 + $0x8] sm:$0xf] }
 0x2f0   : > { %2107 = vmatprep.subr.bf16.mxu1 %v3198_v34  ;;  %2148 = vmatprep.subr.bf16.mxu0 %v3201_v35  ;;  %v1740_v33 = vrot.slane %v1735_v32, %v3880_v57  ;;  %v1744_v34 = vrot.slane %v1735_v32, %v3883_v59 }
 0x2f3   : > { %2108 = vmatpush1.bf16.msra.mxu1 %v3196_v36  ;;  %2149 = vmatpush1.bf16.msra.mxu0 %v3199_v37 }
 0x2f4   : > { %2294 = vmatprep.subr.bf16.mxu1 %v3204_v16 }
 0x389   : > { %v1589_v41 = vpop.f32.mrb[4].mxu1  ;;  %v1630_v42 = vpop.f32.mrb[8].mxu0 }
 0x38a   : > { %v1590_v43 = vadd.f32 %v1589_v41, %v1218_v39  ;;  %v1591_v44 = vpop.f32.mrb[5].mxu1  ;;  %v1632_v45 = vpop.f32.mrb[9].mxu0  ;;  %v1631_v58 = vadd.f32 %v1630_v42, %v1226_v55 }
 0x38b   : > { %v1592_v46 = vadd.f32 %v1591_v44, %v1222_v40  ;;  %v1593_v47 = vpop.f32.mrb[6].mxu1  ;;  %v1634_v48 = vpop.f32.mrb[10].mxu0  ;;  %v1633_v54 = vadd.f32 %v1632_v45, %v1230_v53 }
 0x38c   : > { %v2665_v49 = vmul.f32 -1.442695, %v1590_v43  ;;  %v1594_v50 = vpop.f32.mrb[7].mxu1  ;;  %v1635_v51 = vpop.f32.mrb[11].mxu0  ;;  %v1752_v47 = vrot.slane %v1735_v32, %v3888_v0 }
 0x38d   : > { %v2666_v52 = vmul.f32 -1.442695, %v1592_v46  ;;  %v2667_v56 = vmul.f32 -1.442695, %v1633_v54 }
 0x38e   : > { %3242 = vpow2.f32 %v2665_v49  ;;  %v1748_v49 = vrot.slane %v1735_v32, %v3892_v13 }
 0x38f   : > { %3244 = vpow2.f32 %v2666_v52 }
 0x390   : > { %3246 = vpow2.f32 %v2667_v56 }
 0x391   : > { %3248 = vtanh.f32 %v1631_v58 }
 0x398   : > { %v3243_v60 = vpop.eup %3242 }
 0x399   : > { %v3245_v61 = vpop.eup %3244  ;;  %v1640_v62 = vadd.f32 1.0, %v3243_v60  ;;  %v1667_v60 = vld [vmem:[#allocation16 + $0x10] sm:$0xff] }
 0x39a   : > { %v1646_v63 = vadd.f32 1.0, %v3245_v61  ;;  %v3247_v1 = vpop.eup %3246 }
 0x39b   : > { %3250 = vrcp.f32 %v1640_v62  ;;  %v3249_v2 = vpop.eup %3248  ;;  %v1653_v7 = vadd.f32 1.0, %v3247_v1 }
 0x39c   : > { %3252 = vrcp.f32 %v1646_v63 }
 0x39d   : > { %3254 = vrcp.f32 %v1653_v7 }
 0x3a5   : > { %v3251_v4 = vpop.eup %3250 }
 0x3a6   : > { %v3253_v5 = vpop.eup %3252  ;;  %v1657_v6 = vmul.f32 %v3251_v4, %v3249_v2 }
 0x3a7   : > { %v1656_v8 = vmul.f32 %v3253_v5, %v1145_v3  ;;  %v3255_v10 = vpop.eup %3254 }
 0x3a9   : > { %v1658_v9 = vadd.f32 %v1657_v6, %v1656_v8 }
 0x3ab   : > { %3256 = vtanh.f32 %v1658_v9  ;;  %1662 = vst [vmem:[#allocation16 + $0x8] sm:$0xff] %v1658_v9 }
 0x3b5   : > { %v3257_v11 = vpop.eup %3256 }
 0x3b6   : > { %v1660_v14 = vmul.f32 %v3257_v11, %v3255_v10 }
 0x3b8   : > { %v1663_v15 = vpack.c.bf16 %v1660_v14, %v1660_v14  ;;  %1661 = vst [vmem:[#allocation14 + $0x8] sm:$0xff] %v1660_v14 }
 0x3ba   : > { %2110 = vmatmul.mubr.bf16.vlgmr.msra.gmra.mrb[8].mxu1 %v1663_v15  ;;  %2151 = vmatmul.mubr.bf16.vlgmr.msra.gmra.mrb[12].mxu0 %v1663_v15 }
 0x3bb   : > { %2295 = vmatpush1.bf16.msra.mxu1 %v3202_v17  ;;  %2326 = vmatprep.mubr.bf16.mxu1 %v3571_v28 }
 0x3bc   : > { %2296 = vmatprep.subr.bf16.mxu1 %v3207_v18 }
 0x3bf   : > { %2297 = vmatpush1.bf16.msra.mxu1 %v3205_v19 }
 0x3c0   : > { %2298 = vmatprep.subr.bf16.mxu1 %v3210_v20 }
 0x3c3   : > { %2299 = vmatpush1.bf16.msra.mxu1 %v3208_v21 }
 0x3c4   : > { %2300 = vmatprep.subr.bf16.mxu1 %v3213_v22 }
 0x3c7   : > { %2301 = vmatpush1.bf16.msra.mxu1 %v3211_v23 }
 0x3c8   : > { %2302 = vmatprep.subr.bf16.mxu1 %v3216_v24 }
 0x3cb   : > { %2303 = vmatpush1.bf16.msra.mxu1 %v3214_v25 }
 0x3cc   : > { %2304 = vmatprep.subr.bf16.mxu1 %v3219_v12 }
 0x3cf   : > { %2305 = vmatpush1.bf16.msra.mxu1 %v3217_v26 }
 0x3d0   : > { %2306 = vmatprep.subr.bf16.mxu1 %v3222_v27 }
 0x3d3   : > { %2307 = vmatpush1.bf16.msra.mxu1 %v3220_v29 }
 0x3d4   : > { %2308 = vmatprep.subr.bf16.mxu1 %v3225_v30 }
 0x3d7   : > { %2309 = vmatpush1.bf16.msra.mxu1 %v3223_v31 }
 0x48d   : > { %v2111_v35 = vpop.f32.mrb[8].mxu1  ;;  %v2152_v36 = vpop.f32.mrb[12].mxu0 }
 0x48e   : > { %v2112_v37 = vadd.f32 %v2111_v35, %v1740_v33  ;;  %v2113_v38 = vpop.f32.mrb[9].mxu1  ;;  %v2154_v39 = vpop.f32.mrb[13].mxu0  ;;  %v2153_v51 = vadd.f32 %v2152_v36, %v1748_v49 }
 0x48f   : > { %v2114_v40 = vadd.f32 %v2113_v38, %v1744_v34  ;;  %v2115_v41 = vpop.f32.mrb[10].mxu1  ;;  %v2156_v42 = vpop.f32.mrb[14].mxu0  ;;  %v2155_v48 = vadd.f32 %v2154_v39, %v1752_v47 }
 0x490   : > { %v2732_v43 = vmul.f32 -1.442695, %v2112_v37  ;;  %v2116_v44 = vpop.f32.mrb[11].mxu1  ;;  %v2157_v45 = vpop.f32.mrb[15].mxu0 }
 0x491   : > { %v2733_v46 = vmul.f32 -1.442695, %v2114_v40  ;;  %v2734_v50 = vmul.f32 -1.442695, %v2155_v48 }
 0x492   : > { %3258 = vpow2.f32 %v2732_v43 }
 0x493   : > { %3260 = vpow2.f32 %v2733_v46 }
 0x494   : > { %3262 = vpow2.f32 %v2734_v50 }
 0x495   : > { %3264 = vtanh.f32 %v2153_v51 }
 0x49c   : > { %v3259_v52 = vpop.eup %3258 }
 0x49d   : > { %v3261_v53 = vpop.eup %3260  ;;  %v2162_v54 = vadd.f32 1.0, %v3259_v52 }
 0x49e   : > { %v2168_v55 = vadd.f32 1.0, %v3261_v53  ;;  %v3263_v56 = vpop.eup %3262 }
 0x49f   : > { %3266 = vrcp.f32 %v2162_v54  ;;  %v3265_v58 = vpop.eup %3264  ;;  %v2175_v63 = vadd.f32 1.0, %v3263_v56 }
 0x4a0   : > { %3268 = vrcp.f32 %v2168_v55 }
 0x4a1   : > { %3270 = vrcp.f32 %v2175_v63 }
 0x4a9   : > { %v3267_v61 = vpop.eup %3266 }
 0x4aa   : > { %v3269_v0 = vpop.eup %3268  ;;  %v2179_v62 = vmul.f32 %v3267_v61, %v3265_v58 }
 0x4ab   : > { %v2178_v1 = vmul.f32 %v3269_v0, %v1667_v60  ;;  %v3271_v2 = vpop.eup %3270 }
 0x4ad   : > { %v2180_v13 = vadd.f32 %v2179_v62, %v2178_v1 }
 0x4af   : > { %3272 = vtanh.f32 %v2180_v13  ;;  %2184 = vst [vmem:[#allocation16 + $0x10] sm:$0xff] %v2180_v13 }
 0x4b9   : > { %v3273_v3 = vpop.eup %3272 }
 0x4ba   : > { %v2182_v4 = vmul.f32 %v3273_v3, %v3271_v2 }
 0x4bc   : > { %v2185_v5 = vpack.c.bf16 %v2182_v4, %v2182_v4  ;;  %2183 = vst [vmem:[#allocation14 + $0x10] sm:$0xff] %v2182_v4 }
 0x4be   : > { %2327 = vmatmul.mubr.bf16.vlgmr.msra.gmra.mrb[12].mxu1 %v2185_v5 }
 0x4bf   : > { %3437 = shalt.err (!%p3434_p4)
}
 0x4c0   : > { %s3438_s20 = scalar_lea.hbm %s4008_s9, 384  ;;  %p4046_p9 = pmov %p4045_p6 }
 0x4c1   : > { %p3439_p8 = scmp.ne.s32.totalorder %s4008_s9, %s3438_s20  ;;  %p3444_p2 = scmp.lt.u32.totalorder %s3438_s20, %s4008_s9 }
 0x4c3   : > { %p3440_p12 = pnand %p3439_p8, %p4046_p9 }
 0x4c5   : > { %p3441_p13 = pneg %p3440_p12 }
 0x4c7   : > { %p3446_p0 = pnand %p3444_p2, %p3441_p13 }
 0x4c9   : > { %3449 = shalt.err (!%p3446_p0)
}
 0x4ca   : > { %s3573_s19 = smov 128   ;;  %s3574_s17 = smov 8  }
 0x4cb   : > { %p4047_p3 = pmov %p4045_p6  ;;  %s3575_s25 = smov [#allocation16]  }
 0x4cc   : > { %s2375_s28 = sshll.u32 %s3575_s25, 4  ;;  %s2376_s28 = int_to_ptr.vmem [resolvable:$true] %s2375_s28 }
 0x4cd   : > { %2805 = dma.vmem_to_hbm [thread:$0]  (%p4047_p3), %s2363_s2, 384, %s4008_s9, [#allocation15], %s3573_s19, %s3573_s19, %s3574_s17  }
 0x4ce   : > { %s3450_s4 = scalar_lea.vmem %s2376_s28, 384  ;;  %p4048_p7 = pmov %p4047_p3 }
 0x4cf   : > { %p3451_p6 = scmp.ne.s32.totalorder %s2376_s28, %s3450_s4  ;;  %p3457_p1 = scmp.lt.s32.totalorder %s2376_s28, %s2376_s28 }
 0x4d0   : > { %p3458_p5 = scmp.lt.s32.totalorder %s3450_s4, %s3450_s4 }
 0x4d1   : > { %p3452_p10 = pnand %p3451_p6, %p4048_p7 }
 0x4d2   : > { %p3459_p4 = por %p3458_p5, %p3457_p1 }
 0x4d3   : > { %p3453_p11 = pneg %p3452_p10 }
 0x4d5   : > { %p3460_p8 = pnand %p3459_p4, %p3453_p11 }
 0x4d7   : > { %3463 = shalt.err (!%p3460_p8)
}
 0x4d8   : > { %s3464_s29 = scalar_lea.hbm %s4009_s10, 384  ;;  %p4049_p12 = pmov %p4047_p3 }
 0x4d9   : > { %p3465_p9 = scmp.ne.s32.totalorder %s4009_s10, %s3464_s29  ;;  %p3470_p0 = scmp.lt.u32.totalorder %s3464_s29, %s4009_s10 }
 0x4db   : > { %p3466_p13 = pnand %p3465_p9, %p4049_p12 }
 0x4dd   : > { %p3467_p2 = pneg %p3466_p13 }
 0x4df   : > { %p3472_p3 = pnand %p3470_p0, %p3467_p2 }
 0x4e1   : > { %3475 = shalt.err (!%p3472_p3)
}
 0x4e2   : > { %p4050_p6 = pmov %p4048_p7  ;;  %v2202_v6 = vld [vmem:[%s4004_s5] sm:$0x3]  ;;  %s2760_s27 = sshll.u32 %s3665_s0, 8 }
 0x4e3   : > { %v2207_v7 = vrot.slane %v2202_v6, %v3880_v57  ;;  %v2211_v8 = vrot.slane %v2202_v6, %v3883_v59  ;;  %s2352_s25 = sshll.u32 %s3834_s30, 4  ;;  %p4051_p10 = scmp.ne.s32.totalorder %s4027_s12, 0  ;;  %s3951_s25 = int_to_ptr.vmem [resolvable:$true] %s2352_s25 }
 0x4e4   : > { %2807 = dma.vmem_to_hbm [thread:$0]  (%p4050_p6), %s2376_s28, 384, %s4009_s10, [#allocation15], %s3573_s19, %s3573_s19, %s3574_s17  }
 0x4e5   : > { %s3949_s19 = scalar_lea.hbm %s4007_s8, %s2760_s27  ;;  %s2338_s17 = scalar_lea.sflag [#allocation6], %s378_s14 }
 0x4e6   : > { %s3476_s28 = scalar_lea.vmem %s3951_s25, 256  ;;  %s3576_s21 = smov [#allocation13]  }
 0x4e7   : > { %p3477_p7 = scmp.ne.s32.totalorder %s3951_s25, %s3476_s28  ;;  %s3480_s29 = sshll.u32 %s3576_s21, 4  ;;  %s3481_s29 = int_to_ptr.vmem [resolvable:$false] %s3480_s29 }
 0x4e8   : > { %s3482_s15 = scalar_lea.vmem %s3481_s29, 512  ;;  %p3483_p5 = scmp.lt.s32.totalorder %s3951_s25, %s3481_s29 }
 0x4e9   : > { %p3478_p11 = pnand %p3477_p7, %p4051_p10  ;;  %p3484_p4 = scmp.lt.s32.totalorder %s3482_s15, %s3476_s28 }
 0x4eb   : > { %p3479_p1 = pneg %p3478_p11  ;;  %p3485_p8 = por %p3484_p4, %p3483_p5 }
 0x4ed   : > { %p3486_p9 = pnand %p3485_p8, %p3479_p1 }
 0x591   : > { %v2328_v9 = vpop.f32.mrb[12].mxu1 }
 0x592   : > { %v2329_v10 = vadd.f32 %v2328_v9, %v2207_v7  ;;  %v2330_v11 = vpop.f32.mrb[13].mxu1 }
 0x593   : > { %v2331_v14 = vadd.f32 %v2330_v11, %v2211_v8  ;;  %v2332_v15 = vpop.f32.mrb[14].mxu1 }
 0x594   : > { %2335 = vst [vmem:[%s3834_s30] sm:$0xff] %v2329_v10  ;;  %v2333_v57 = vpop.f32.mrb[15].mxu1 }
 0x595   : > { %2336 = vst [vmem:[%s3834_s30 + $0x8] sm:$0xff] %v2331_v14 }
 0x596   : > { %3489 = shalt.err (!%p3486_p9)
}
 0x597   : > { %s3490_s14 = scalar_lea.hbm %s3949_s19, 256  ;;  %s3494_s20 = scalar_lea.hbm %s4007_s8, 2048 }
 0x598   : > { %p3491_p12 = scmp.ne.s32.totalorder %s3949_s19, %s3490_s14  ;;  %p3495_p0 = scmp.lt.u32.totalorder %s3949_s19, %s4007_s8 }
 0x599   : > { %p3496_p3 = scmp.lt.u32.totalorder %s3494_s20, %s3490_s14  ;;  %p3498_p7 = scmp.lt.u32.totalorder %s3490_s14, %s3949_s19 }
 0x59a   : > { %p3492_p13 = pnand %p3491_p12, %p4051_p10 }
 0x59b   : > { %p3497_p6 = por %p3496_p3, %p3495_p0 }
 0x59c   : > { %p3493_p2 = pneg %p3492_p13 }
 0x59d   : > { %p3499_p11 = por %p3498_p7, %p3497_p6 }
 0x59f   : > { %p3500_p1 = pnand %p3499_p11, %p3493_p2 }
 0x5a1   : > { %3503 = shalt.err (!%p3500_p1)
}
 0x5a2   : > { %2803 = dma.vmem_to_hbm [thread:$0]  (%p4051_p10), %s3951_s25, 256, %s3949_s19, %s2338_s17  }
 0x5a3   : > { %p4052_p5 = scmp.eq.s32.totalorder %s3665_s0, 7 }
 0x5a5   : > { %3535 = dma.done.wait (%p4052_p5), [#allocation15], 768   ;;  %p4053_p4 = pmov %p4052_p5 }
 0x5a7   : > { %3537 = vsyncadd (%p4053_p4), [#allocation15], 4294966528 }
 0x5a8 PF: > { %s4054_s13 = sld [smem:[#allocation23_spill]]  ;;  %s4055_s22 = sld [smem:[#allocation27_spill]] }
 0x5a9   : > { %p2847_p8 = scmp.ge.s32.totalorder %s3556_s26, 2 }
 0x5ae   : > { %s2398_s18 = sand.u32 1, %s4054_s13   ;;  %p4056_p9 = scmp.ne.s32.totalorder %s4055_s22, 0 }
 0x5af   : > { %s2399_s27 = scalar_lea.sflag [#allocation6], %s2398_s18 }
 0x5b0   : > { %p2830_p12 = pnand %p2847_p8, %p4056_p9 }
 0x5b2   : > { %3539 = dma.done.wait (!%p2830_p12), %s2399_s27, 256  }
 0x5b3   : > { %3541 = vsyncadd (!%p2830_p12), %s2399_s27, 4294967040  ;;  %s4057_s26 = sld [smem:[#allocation25_spill]]  ;;  %s4058_s12 = sld [smem:[#allocation24_spill]] }
 0x5b4   : > { %s4059_s25 = sld [smem:[#allocation26_spill]]  ;;  %s4060_s23 = smov %s3548_s24 }
 0x5b9   : > { %p29_p10 = scmp.ge.s32.totalorder %s4057_s26, 10   ;;  %s4061_s24 = smov %s4058_s12 }
 0x5bb   :  { %31 = sbr.rel (!%p29_p10) target bundleno = 20 (0x14), region = 129 }
 0x5c2   :  { %2404 = vsyncpa [#allocation5], 1 }
 0x5c3   :  { %2406 = vsyncpa [#allocation5 + $0x1], 1 }
 0x5c4   :  { %2407 = vsyncpa [#allocation8], 1 }
 0x5c5   :  { %2408 = vsyncpa [#allocation11], 1 }
 0x5c6   :  { %2409 = vsyncpa [#allocation6], 1 }
 0x5c7   :  { %2411 = vsyncpa [#allocation6 + $0x1], 1 }
 0x5c8   :  { %2412 = vsyncpa [#allocation15], 1 }

</bundles_post_ra>
